<compile_context>
chip_gen: v7x
topology: tpu7x:2x2x1
jax: 0.10.0
libtpu: 0.0.40
codegen_flags: <defaults>
</compile_context>

<pallas_src>
import jax
import jax.numpy as jnp
from jax.experimental import pallas as pl
from jax.experimental.pallas import tpu as pltpu


# ----------------------------------------------------------------------------
# Kernel
# ----------------------------------------------------------------------------
def bottleneck_kernel(x_ref, w1_ref, w2_ref, w3_ref,
                      b1_ref, b2_ref, b3_ref, out_ref):
    x = x_ref[...]                                 # (TB, W, Cin) bf16
    TB, W, Cin = x.shape
    width = w1_ref.shape[1]
    Cout = w3_ref.shape[1]
    cdtype = w1_ref.dtype                          # matmul dtype (bf16)
    M = TB * W                                     # free sublane merge (W % 8 == 0)

    # ---- conv1 (1x1, BN scale folded into w1) + bias + relu (f32) ----
    h = jnp.dot(x.reshape(M, Cin), w1_ref[...],
                preferred_element_type=jnp.float32).reshape(TB, W, width)
    h = jnp.maximum(h + b1_ref[...].reshape(1, 1, width), 0.0)

    # ---- conv2 (kernel (1,3), padding (0,1), BN folded) ----
    # Three K=width matmuls on W-shifted bf16 activations, accumulated in f32:
    #   out[w] = h[w-1] @ W0 + h[w] @ W1 + h[w+1] @ W2
    # No (TB, W, 3*width) f32 im2col buffer is ever materialized.
    h_b = h.astype(cdtype)                         # cast once
    zrow = jnp.zeros((TB, 1, width), cdtype)
    left = jnp.concatenate([zrow, h_b[:, :W - 1, :]], axis=1)    # h[w-1]
    right = jnp.concatenate([h_b[:, 1:, :], zrow], axis=1)       # h[w+1]
    h2 = jnp.dot(h_b.reshape(M, width), w2_ref[1],
                 preferred_element_type=jnp.float32)
    h2 = h2 + jnp.dot(left.reshape(M, width), w2_ref[0],
                      preferred_element_type=jnp.float32)
    h2 = h2 + jnp.dot(right.reshape(M, width), w2_ref[2],
                      preferred_element_type=jnp.float32)
    h2 = jnp.maximum(h2.reshape(TB, W, width) + b2_ref[...].reshape(1, 1, width),
                     0.0)

    # ---- conv3 (1x1, BN folded) + bias + residual (f32) + relu ----
    h3 = jnp.dot(h2.astype(cdtype).reshape(M, width), w3_ref[...],
                 preferred_element_type=jnp.float32).reshape(TB, W, Cout)
    h3 = h3 + b3_ref[...].reshape(1, 1, Cout) + x.astype(jnp.float32)
    out_ref[...] = jnp.maximum(h3, 0.0).astype(out_ref.dtype)


# ----------------------------------------------------------------------------
# Generation-aware tile / VMEM sizing
# ----------------------------------------------------------------------------
def _vmem_budgets():
    """(tile_budget_bytes, vmem_limit_bytes) derived from the chip generation."""
    cap = None
    try:
        cap = getattr(pltpu.get_tpu_info(), "vmem_capacity_bytes", None)
    except Exception:
        cap = None
    if cap is None:
        cap = 64 * 1024 * 1024                     # conservative default (v7x-class)
    if cap <= 64 * 1024 * 1024:                    # v7x: 64 MiB per TensorCore
        return 24 * 1024 * 1024, 44 * 1024 * 1024
    return 48 * 1024 * 1024, 96 * 1024 * 1024      # v5e / v6e: 128 MiB


def _row_alignment(W):
    """Row-tile alignment so TB*W is a multiple of the MXU row granularity."""
    if W % 128 == 0:
        return 8
    for target in (256, 128):
        if target % W == 0:
            return max(8, target // W)
    return 8


def _choose_tile_rows(B, W, cin, width, cout, tile_budget_bytes):
    f32, bf16 = 4, 2
    dbuf = 2  # pipeline double-buffering of the streamed x / out tiles
    bytes_per_row = W * (
        dbuf * bf16 * (cin + cout)            # bf16 x / out tiles (double-buffered)
        + f32 * (cin + 2 * width + cout)      # f32 intermediates: x_up, h, h2, h3
        + bf16 * 4 * width                    # bf16 copies: h_b, left, right, h2_b
    )
    # Weights / biases resident in VMEM (count 2x in case they end up double-buffered).
    const_bytes = (2 * bf16 * (cin * width + 3 * width * width + width * cout)
                   + 2 * f32 * (2 * width + cout))
    avail = max(tile_budget_bytes - const_bytes, bytes_per_row)
    tb = avail // bytes_per_row
    align = _row_alignment(W)
    tb = max(align, (tb // align) * align)
    # Keep >= 4 grid steps when B allows it (megacore sharding + DMA overlap).
    if B >= 4 * align:
        cap = max(align, (B // 4) // align * align)
        tb = min(tb, cap)
    return int(max(1, min(tb, B)))


# ----------------------------------------------------------------------------
# Wrapper
# ----------------------------------------------------------------------------
def _pallas_forward_rows(x_rows, params, tile_rows, vmem_limit, single_buffer_consts):
    w1, w2, w3, b1, b2, b3 = params
    B, W, Cin = x_rows.shape
    Cout = w3.shape[1]
    grid = (pl.cdiv(B, tile_rows),)

    act_spec = pl.BlockSpec((tile_rows, W, Cin), lambda i: (i, 0, 0))
    out_spec = pl.BlockSpec((tile_rows, W, Cout), lambda i: (i, 0, 0))

    def const_spec(arr):
        nd = arr.ndim
        kwargs = {}
        if single_buffer_consts:
            # Constant block index -> weights stay VMEM-resident; no 2nd buffer.
            kwargs["pipeline_mode"] = pl.Buffered(1)
        return pl.BlockSpec(arr.shape, lambda i: (0,) * nd, **kwargs)

    return pl.pallas_call(
        bottleneck_kernel,
        out_shape=jax.ShapeDtypeStruct((B, W, Cout), jnp.bfloat16),
        grid=grid,
        in_specs=[act_spec,
                  const_spec(w1), const_spec(w2), const_spec(w3),
                  const_spec(b1), const_spec(b2), const_spec(b3)],
        out_specs=out_spec,
        compiler_params=pltpu.CompilerParams(
            dimension_semantics=("parallel",),        # megacore sharding on v7x
            vmem_limit_bytes=vmem_limit),
    )(x_rows, w1, w2, w3, b1, b2, b3)


def bottleneck_forward_rows(x_rows, params, *, tile_rows=None):
    """x_rows: (B=N*H, W, Cin); streamed as bf16.  Returns (B, W, Cout) bf16."""
    w1, w2, w3, b1, b2, b3 = params
    B, W, Cin = x_rows.shape
    width = w1.shape[1]
    Cout = w3.shape[1]
    assert Cin == Cout, "downsample=None requires inplanes == planes * expansion"
    assert W % 8 == 0, "W must be a multiple of 8 so (TB,W,C)->(TB*W,C) is free"
    x_rows = x_rows.astype(jnp.bfloat16)

    tile_budget, vmem_limit = _vmem_budgets()
    if tile_rows is None:
        tile_rows = _choose_tile_rows(B, W, Cin, width, Cout, tile_budget)

    try:
        return _pallas_forward_rows(x_rows, params, tile_rows, vmem_limit, True)
    except Exception:
        # Pallas version without BlockSpec pipeline_mode / Buffered(1):
        # fall back to default double-buffered constant blocks.
        return _pallas_forward_rows(x_rows, params, tile_rows, vmem_limit, False)


def bottleneck_forward(x_nchw, params, *, tile_rows=None):
    """NCHW adapter matching the PyTorch module interface (returns f32 NCHW).

    In a real model keep the surrounding ops in the rows (N*H, W, C) bf16
    layout and call bottleneck_forward_rows directly to avoid these HBM
    round-trip transposes/casts per block.
    """
    N, C, H, W = x_nchw.shape
    x_rows = jnp.transpose(x_nchw, (0, 2, 3, 1)).reshape(N * H, W, C)
    out_rows = bottleneck_forward_rows(x_rows, params, tile_rows=tile_rows)
    Cout = out_rows.shape[-1]
    return jnp.transpose(out_rows.reshape(N, H, W, Cout),
                         (0, 3, 1, 2)).astype(jnp.float32)


# ----------------------------------------------------------------------------
# Parameter construction (PyTorch layouts) + host-side BN folding
# ----------------------------------------------------------------------------
def make_raw_params(key, inplanes, planes, base_width=64, groups=1):
    expansion = 4
    width = int(planes * (base_width / 64.0)) * groups
    cout = planes * expansion
    assert cout == inplanes, "downsample=None requires inplanes == planes*expansion"

    ks = jax.random.split(key, 15)
    w1_pt = jax.random.normal(ks[0], (width, inplanes, 1, 1), jnp.float32) * 0.1
    w2_pt = jax.random.normal(ks[1], (width, width, 1, 3), jnp.float32) * 0.1
    w3_pt = jax.random.normal(ks[2], (cout, width, 1, 1), jnp.float32) * 0.1

    def bn(k0, k1, k2, k3, c):
        gamma = 1.0 + 0.1 * jax.random.normal(k0, (c,), jnp.float32)
        beta = 0.1 * jax.random.normal(k1, (c,), jnp.float32)
        mean = 0.1 * jax.random.normal(k2, (c,), jnp.float32)
        var = 1.0 + jnp.abs(0.1 * jax.random.normal(k3, (c,), jnp.float32))
        return (gamma, beta, mean, var)

    bn1 = bn(ks[3], ks[4], ks[5], ks[6], width)
    bn2 = bn(ks[7], ks[8], ks[9], ks[10], width)
    bn3 = bn(ks[11], ks[12], ks[13], ks[14], cout)
    return (w1_pt, w2_pt, w3_pt, bn1, bn2, bn3)


def prepare_params(raw, matmul_dtype=jnp.bfloat16, eps=1e-5):
    """Fold eval-mode BN into conv weights, convert to kernel layout / dtype."""
    w1_pt, w2_pt, w3_pt, bn1, bn2, bn3 = raw

    def fold(bn):
        gamma, beta, mean, var = bn
        scale = gamma / jnp.sqrt(var + eps)
        bias = beta - mean * scale
        return scale, bias

    s1, b1 = fold(bn1)
    s2, b2 = fold(bn2)
    s3, b3 = fold(bn3)

    width = w1_pt.shape[0]
    cout = w3_pt.shape[0]

    # conv1: (width, Cin, 1, 1) -> (Cin, width), fold s1 per output column
    w1 = jnp.transpose(w1_pt[:, :, 0, 0], (1, 0)) * s1[None, :]
    # conv2: (width, width, 1, 3) -> (3, width_in, width_out), fold s2
    w2 = jnp.transpose(w2_pt[:, :, 0, :], (2, 1, 0)) * s2[None, None, :]
    # conv3: (Cout, width, 1, 1) -> (width, Cout), fold s3
    w3 = jnp.transpose(w3_pt[:, :, 0, 0], (1, 0)) * s3[None, :]

    return (w1.astype(matmul_dtype), w2.astype(matmul_dtype), w3.astype(matmul_dtype),
            b1.reshape(1, width).astype(jnp.float32),
            b2.reshape(1, width).astype(jnp.float32),
            b3.reshape(1, cout).astype(jnp.float32))


# ----------------------------------------------------------------------------
# References
# ----------------------------------------------------------------------------
def reference_forward_rows(x_rows_bf16, params):
    """Mirrors the kernel math (folded bf16 weights, f32 accumulation)."""
    w1, w2, w3, b1, b2, b3 = params
    x = x_rows_bf16
    B, W, _ = x.shape
    width = w1.shape[1]
    f32 = jnp.float32

    h = jnp.einsum('bwc,cd->bwd', x, w1, preferred_element_type=f32)
    h = jnp.maximum(h + b1.reshape(1, 1, -1), 0.0)

    h_b = h.astype(w1.dtype)
    zrow = jnp.zeros((B, 1, width), w1.dtype)
    left = jnp.concatenate([zrow, h_b[:, :W - 1, :]], axis=1)
    right = jnp.concatenate([h_b[:, 1:, :], zrow], axis=1)
    h2 = (jnp.einsum('bwc,cd->bwd', h_b, w2[1], preferred_element_type=f32)
          + jnp.einsum('bwc,cd->bwd', left, w2[0], preferred_element_type=f32)
          + jnp.einsum('bwc,cd->bwd', right, w2[2], preferred_element_type=f32))
    h2 = jnp.maximum(h2 + b2.reshape(1, 1, -1), 0.0)

    h3 = jnp.einsum('bwd,de->bwe', h2.astype(w1.dtype), w3,
                    preferred_element_type=f32)
    h3 = h3 + b3.reshape(1, 1, -1) + x.astype(f32)
    return jnp.maximum(h3, 0.0)


def torch_style_reference(x_nchw, raw, eps=1e-5):
    """Independent f32 reference: lax.conv_general_dilated + unfused eval-mode BN."""
    w1_pt, w2_pt, w3_pt, bn1, bn2, bn3 = raw

    def conv(x, w, pad):
        return jax.lax.conv_general_dilated(
            x, w, window_strides=(1, 1), padding=pad,
            dimension_numbers=('NCHW', 'OIHW', 'NCHW'))

    def bn(x, p):
        gamma, beta, mean, var = p
        s = gamma / jnp.sqrt(var + eps)
        return x * s[None, :, None, None] + (beta - mean * s)[None, :, None, None]

    out = jnp.maximum(bn(conv(x_nchw, w1_pt, 'VALID'), bn1), 0.0)
    out = jnp.maximum(bn(conv(out, w2_pt, ((0, 0), (1, 1))), bn2), 0.0)
    out = bn(conv(out, w3_pt, 'VALID'), bn3)
    return jnp.maximum(out + x_nchw, 0.0)


# ----------------------------------------------------------------------------
# Smoke test
# ----------------------------------------------------------------------------
if __name__ == "__main__":
    key = jax.random.PRNGKey(0)
    k_x, k_p = jax.random.split(key)

    # Small but lane-aligned config: base_width=256 -> width = 4*planes = 128,
    # inplanes = Cout = 128, so every channel dim fills the 128-lane vregs.
    N, inplanes, planes, base_width, H, W = 2, 128, 32, 256, 16, 16
    x = jax.random.normal(k_x, (N, inplanes, H, W), jnp.float32)
    # Quantize the input once so kernel and both references see identical bf16 values.
    x = x.astype(jnp.bfloat16).astype(jnp.float32)

    raw = make_raw_params(k_p, inplanes, planes, base_width=base_width)
    params = prepare_params(raw, matmul_dtype=jnp.bfloat16)

    # tile_rows=8 forces a 4-step row grid (B = N*H = 32) to exercise the
    # pipelined / tiled path even at this toy size.
    out = bottleneck_forward(x, params, tile_rows=8)
    out = jax.block_until_ready(out)
    assert out.shape == x.shape

    # Check 1 (tight): mirrored reference using the same folded bf16 math.
    x_rows = jnp.transpose(x, (0, 2, 3, 1)).reshape(N * H, W, inplanes)
    ref_rows = reference_forward_rows(x_rows.astype(jnp.bfloat16), params)
    ref_rows = ref_rows.astype(jnp.bfloat16).astype(jnp.float32)
    out_rows = jnp.transpose(out, (0, 2, 3, 1)).reshape(N * H, W, inplanes)
    err1 = float(jnp.max(jnp.abs(out_rows - ref_rows)))
    assert jnp.allclose(out_rows, ref_rows, atol=3e-2, rtol=3e-2), \
        f"mismatch vs mirrored JAX reference (max abs err {err1})"

    # Check 2 (independent): f32 conv_general_dilated + unfused BN, PyTorch math.
    ref_t = torch_style_reference(x, raw)
    err2 = float(jnp.max(jnp.abs(out - ref_t)))
    assert jnp.allclose(out, ref_t, atol=1.5e-1, rtol=1e-1), \
        f"mismatch vs independent f32 conv/BN reference (max abs err {err2})"

    print("KERNEL_OK")
</pallas_src>

<mosaic_0001>
module attributes {stable_mosaic.version = 11 : i64} {
  func.func @bottleneck_kernel(%arg0: i32, %arg1: memref<8x16x128xbf16, #tpu.memory_space<vmem>>, %arg2: memref<128x128xbf16, #tpu.memory_space<vmem>>, %arg3: memref<3x128x128xbf16, #tpu.memory_space<vmem>>, %arg4: memref<128x128xbf16, #tpu.memory_space<vmem>>, %arg5: memref<1x128xf32, #tpu.memory_space<vmem>>, %arg6: memref<1x128xf32, #tpu.memory_space<vmem>>, %arg7: memref<1x128xf32, #tpu.memory_space<vmem>>, %arg8: memref<8x16x128xbf16, #tpu.memory_space<vmem>>) attributes {dimension_semantics = [#tpu.dimension_semantics<parallel>], iteration_bounds = array<i64: 4>, scalar_prefetch = 0 : i64, scratch_operands = 0 : i64, tpu.core_type = #tpu.core_type<tc>, window_params = [{transform_indices = @transform_0, window_bounds = array<i64: 8, 16, 128>}, {pipeline_mode = #tpu.pipeline_mode<synchronous>, transform_indices = @transform_1, window_bounds = array<i64: 128, 128>}, {pipeline_mode = #tpu.pipeline_mode<synchronous>, transform_indices = @transform_2, window_bounds = array<i64: 3, 128, 128>}, {pipeline_mode = #tpu.pipeline_mode<synchronous>, transform_indices = @transform_3, window_bounds = array<i64: 128, 128>}, {pipeline_mode = #tpu.pipeline_mode<synchronous>, transform_indices = @transform_4, window_bounds = array<i64: 1, 128>}, {pipeline_mode = #tpu.pipeline_mode<synchronous>, transform_indices = @transform_5, window_bounds = array<i64: 1, 128>}, {pipeline_mode = #tpu.pipeline_mode<synchronous>, transform_indices = @transform_6, window_bounds = array<i64: 1, 128>}, {transform_indices = @transform_7, window_bounds = array<i64: 8, 16, 128>}]} {
    %c0 = arith.constant 0 : index
    %c0_0 = arith.constant 0 : index
    %c0_1 = arith.constant 0 : index
    %0 = vector.load %arg1[%c0, %c0_0, %c0_1] : memref<8x16x128xbf16, #tpu.memory_space<vmem>>, vector<8x16x128xbf16>
    %1 = vector.shape_cast %0 : vector<8x16x128xbf16> to vector<128x128xbf16>
    %c0_2 = arith.constant 0 : index
    %c0_3 = arith.constant 0 : index
    %2 = vector.load %arg2[%c0_2, %c0_3] : memref<128x128xbf16, #tpu.memory_space<vmem>>, vector<128x128xbf16>
    %cst = arith.constant dense<0.000000e+00> : vector<128x128xf32>
    %3 = tpu.matmul %1, %2, %cst {dimension_numbers = #tpu.dot_dimension_numbers<[1], [0], [0], [1], [0, 0, 1, 1], [], []>} : vector<128x128xbf16>, vector<128x128xbf16>, vector<128x128xf32> -> vector<128x128xf32>
    %4 = vector.shape_cast %3 : vector<128x128xf32> to vector<8x16x128xf32>
    %c0_4 = arith.constant 0 : index
    %c0_5 = arith.constant 0 : index
    %5 = vector.load %arg5[%c0_4, %c0_5] : memref<1x128xf32, #tpu.memory_space<vmem>>, vector<1x128xf32>
    %6 = vector.shape_cast %5 : vector<1x128xf32> to vector<1x1x128xf32>
    %7 = vector.broadcast %6 : vector<1x1x128xf32> to vector<8x16x128xf32>
    %8 = arith.addf %4, %7 : vector<8x16x128xf32>
    %cst_6 = arith.constant 0.000000e+00 : f32
    %9 = vector.broadcast %cst_6 : f32 to vector<8x16x128xf32>
    %10 = arith.maximumf %8, %9 : vector<8x16x128xf32>
    %11 = arith.truncf %10 : vector<8x16x128xf32> to vector<8x16x128xbf16>
    %cst_7 = arith.constant 0.000000e+00 : bf16
    %12 = vector.broadcast %cst_7 : bf16 to vector<8x1x128xbf16>
    %13 = vector.extract_strided_slice %11 {offsets = [0, 0, 0], sizes = [8, 15, 128], strides = [1, 1, 1]} : vector<8x16x128xbf16> to vector<8x15x128xbf16>
    %14 = tpu.concatenate %12, %13 in 1 : vector<8x1x128xbf16>, vector<8x15x128xbf16> -> vector<8x16x128xbf16>
    %15 = vector.extract_strided_slice %11 {offsets = [0, 1, 0], sizes = [8, 15, 128], strides = [1, 1, 1]} : vector<8x16x128xbf16> to vector<8x15x128xbf16>
    %16 = tpu.concatenate %15, %12 in 1 : vector<8x15x128xbf16>, vector<8x1x128xbf16> -> vector<8x16x128xbf16>
    %17 = vector.shape_cast %11 : vector<8x16x128xbf16> to vector<128x128xbf16>
    %c1 = arith.constant 1 : index
    %c0_8 = arith.constant 0 : index
    %c0_9 = arith.constant 0 : index
    %18 = vector.load %arg3[%c1, %c0_8, %c0_9] : memref<3x128x128xbf16, #tpu.memory_space<vmem>>, vector<1x128x128xbf16>
    %19 = vector.shape_cast %18 : vector<1x128x128xbf16> to vector<128x128xbf16>
    %cst_10 = arith.constant dense<0.000000e+00> : vector<128x128xf32>
    %20 = tpu.matmul %17, %19, %cst_10 {dimension_numbers = #tpu.dot_dimension_numbers<[1], [0], [0], [1], [0, 0, 1, 1], [], []>} : vector<128x128xbf16>, vector<128x128xbf16>, vector<128x128xf32> -> vector<128x128xf32>
    %21 = vector.shape_cast %14 : vector<8x16x128xbf16> to vector<128x128xbf16>
    %c0_11 = arith.constant 0 : index
    %c0_12 = arith.constant 0 : index
    %c0_13 = arith.constant 0 : index
    %22 = vector.load %arg3[%c0_11, %c0_12, %c0_13] : memref<3x128x128xbf16, #tpu.memory_space<vmem>>, vector<1x128x128xbf16>
    %23 = vector.shape_cast %22 : vector<1x128x128xbf16> to vector<128x128xbf16>
    %cst_14 = arith.constant dense<0.000000e+00> : vector<128x128xf32>
    %24 = tpu.matmul %21, %23, %cst_14 {dimension_numbers = #tpu.dot_dimension_numbers<[1], [0], [0], [1], [0, 0, 1, 1], [], []>} : vector<128x128xbf16>, vector<128x128xbf16>, vector<128x128xf32> -> vector<128x128xf32>
    %25 = arith.addf %20, %24 : vector<128x128xf32>
    %26 = vector.shape_cast %16 : vector<8x16x128xbf16> to vector<128x128xbf16>
    %c2 = arith.constant 2 : index
    %c0_15 = arith.constant 0 : index
    %c0_16 = arith.constant 0 : index
    %27 = vector.load %arg3[%c2, %c0_15, %c0_16] : memref<3x128x128xbf16, #tpu.memory_space<vmem>>, vector<1x128x128xbf16>
    %28 = vector.shape_cast %27 : vector<1x128x128xbf16> to vector<128x128xbf16>
    %cst_17 = arith.constant dense<0.000000e+00> : vector<128x128xf32>
    %29 = tpu.matmul %26, %28, %cst_17 {dimension_numbers = #tpu.dot_dimension_numbers<[1], [0], [0], [1], [0, 0, 1, 1], [], []>} : vector<128x128xbf16>, vector<128x128xbf16>, vector<128x128xf32> -> vector<128x128xf32>
    %30 = arith.addf %25, %29 : vector<128x128xf32>
    %31 = vector.shape_cast %30 : vector<128x128xf32> to vector<8x16x128xf32>
    %c0_18 = arith.constant 0 : index
    %c0_19 = arith.constant 0 : index
    %32 = vector.load %arg6[%c0_18, %c0_19] : memref<1x128xf32, #tpu.memory_space<vmem>>, vector<1x128xf32>
    %33 = vector.shape_cast %32 : vector<1x128xf32> to vector<1x1x128xf32>
    %34 = vector.broadcast %33 : vector<1x1x128xf32> to vector<8x16x128xf32>
    %35 = arith.addf %31, %34 : vector<8x16x128xf32>
    %cst_20 = arith.constant 0.000000e+00 : f32
    %36 = vector.broadcast %cst_20 : f32 to vector<8x16x128xf32>
    %37 = arith.maximumf %35, %36 : vector<8x16x128xf32>
    %38 = arith.truncf %37 : vector<8x16x128xf32> to vector<8x16x128xbf16>
    %39 = vector.shape_cast %38 : vector<8x16x128xbf16> to vector<128x128xbf16>
    %c0_21 = arith.constant 0 : index
    %c0_22 = arith.constant 0 : index
    %40 = vector.load %arg4[%c0_21, %c0_22] : memref<128x128xbf16, #tpu.memory_space<vmem>>, vector<128x128xbf16>
    %cst_23 = arith.constant dense<0.000000e+00> : vector<128x128xf32>
    %41 = tpu.matmul %39, %40, %cst_23 {dimension_numbers = #tpu.dot_dimension_numbers<[1], [0], [0], [1], [0, 0, 1, 1], [], []>} : vector<128x128xbf16>, vector<128x128xbf16>, vector<128x128xf32> -> vector<128x128xf32>
    %42 = vector.shape_cast %41 : vector<128x128xf32> to vector<8x16x128xf32>
    %c0_24 = arith.constant 0 : index
    %c0_25 = arith.constant 0 : index
    %43 = vector.load %arg7[%c0_24, %c0_25] : memref<1x128xf32, #tpu.memory_space<vmem>>, vector<1x128xf32>
    %44 = vector.shape_cast %43 : vector<1x128xf32> to vector<1x1x128xf32>
    %45 = vector.broadcast %44 : vector<1x1x128xf32> to vector<8x16x128xf32>
    %46 = arith.addf %42, %45 : vector<8x16x128xf32>
    %47 = arith.extf %0 : vector<8x16x128xbf16> to vector<8x16x128xf32>
    %48 = arith.addf %46, %47 : vector<8x16x128xf32>
    %cst_26 = arith.constant 0.000000e+00 : f32
    %49 = vector.broadcast %cst_26 : f32 to vector<8x16x128xf32>
    %50 = arith.maximumf %48, %49 : vector<8x16x128xf32>
    %51 = arith.truncf %50 : vector<8x16x128xf32> to vector<8x16x128xbf16>
    %c0_27 = arith.constant 0 : index
    %c0_28 = arith.constant 0 : index
    %c0_29 = arith.constant 0 : index
    %52 = vector.load %arg8[%c0_27, %c0_28, %c0_29] : memref<8x16x128xbf16, #tpu.memory_space<vmem>>, vector<8x16x128xbf16>
    tpu.vector_store %arg8[%c0_27, %c0_28, %c0_29], %51 {strides = array<i32>} : memref<8x16x128xbf16, #tpu.memory_space<vmem>>, vector<8x16x128xbf16>,
    return
  }
  func.func @transform_0(%arg0: i32) -> (i32, i32, i32) {
    %c0_i32 = arith.constant 0 : i32
    %c0_i32_0 = arith.constant 0 : i32
    %c0_i32_1 = arith.constant 0 : i32
    return %arg0, %c0_i32, %c0_i32_0 : i32, i32, i32
  }
  func.func @transform_1(%arg0: i32) -> (i32, i32) {
    %c0_i32 = arith.constant 0 : i32
    %c0_i32_0 = arith.constant 0 : i32
    %c0_i32_1 = arith.constant 0 : i32
    return %c0_i32, %c0_i32_0 : i32, i32
  }
  func.func @transform_2(%arg0: i32) -> (i32, i32, i32) {
    %c0_i32 = arith.constant 0 : i32
    %c0_i32_0 = arith.constant 0 : i32
    %c0_i32_1 = arith.constant 0 : i32
    %c0_i32_2 = arith.constant 0 : i32
    return %c0_i32, %c0_i32_0, %c0_i32_1 : i32, i32, i32
  }
  func.func @transform_3(%arg0: i32) -> (i32, i32) {
    %c0_i32 = arith.constant 0 : i32
    %c0_i32_0 = arith.constant 0 : i32
    %c0_i32_1 = arith.constant 0 : i32
    return %c0_i32, %c0_i32_0 : i32, i32
  }
  func.func @transform_4(%arg0: i32) -> (i32, i32) {
    %c0_i32 = arith.constant 0 : i32
    %c0_i32_0 = arith.constant 0 : i32
    %c0_i32_1 = arith.constant 0 : i32
    return %c0_i32, %c0_i32_0 : i32, i32
  }
  func.func @transform_5(%arg0: i32) -> (i32, i32) {
    %c0_i32 = arith.constant 0 : i32
    %c0_i32_0 = arith.constant 0 : i32
    %c0_i32_1 = arith.constant 0 : i32
    return %c0_i32, %c0_i32_0 : i32, i32
  }
  func.func @transform_6(%arg0: i32) -> (i32, i32) {
    %c0_i32 = arith.constant 0 : i32
    %c0_i32_0 = arith.constant 0 : i32
    %c0_i32_1 = arith.constant 0 : i32
    return %c0_i32, %c0_i32_0 : i32, i32
  }
  func.func @transform_7(%arg0: i32) -> (i32, i32, i32) {
    %c0_i32 = arith.constant 0 : i32
    %c0_i32_0 = arith.constant 0 : i32
    %c0_i32_1 = arith.constant 0 : i32
    return %arg0, %c0_i32, %c0_i32_0 : i32, i32, i32
  }
}

module attributes {stable_mosaic.version = 11 : i64} {
  func.func @bottleneck_kernel(%arg0: i32, %arg1: memref<8x16x128xbf16, #tpu.memory_space<vmem>>, %arg2: memref<128x128xbf16, #tpu.memory_space<vmem>>, %arg3: memref<3x128x128xbf16, #tpu.memory_space<vmem>>, %arg4: memref<128x128xbf16, #tpu.memory_space<vmem>>, %arg5: memref<1x128xf32, #tpu.memory_space<vmem>>, %arg6: memref<1x128xf32, #tpu.memory_space<vmem>>, %arg7: memref<1x128xf32, #tpu.memory_space<vmem>>, %arg8: memref<8x16x128xbf16, #tpu.memory_space<vmem>>) attributes {dimension_semantics = [#tpu.dimension_semantics<parallel>], iteration_bounds = array<i64: 4>, scalar_prefetch = 0 : i64, scratch_operands = 0 : i64, tpu.core_type = #tpu.core_type<tc>, window_params = [{transform_indices = @transform_0, window_bounds = array<i64: 8, 16, 128>}, {pipeline_mode = #tpu.pipeline_mode<synchronous>, transform_indices = @transform_1, window_bounds = array<i64: 128, 128>}, {pipeline_mode = #tpu.pipeline_mode<synchronous>, transform_indices = @transform_2, window_bounds = array<i64: 3, 128, 128>}, {pipeline_mode = #tpu.pipeline_mode<synchronous>, transform_indices = @transform_3, window_bounds = array<i64: 128, 128>}, {pipeline_mode = #tpu.pipeline_mode<synchronous>, transform_indices = @transform_4, window_bounds = array<i64: 1, 128>}, {pipeline_mode = #tpu.pipeline_mode<synchronous>, transform_indices = @transform_5, window_bounds = array<i64: 1, 128>}, {pipeline_mode = #tpu.pipeline_mode<synchronous>, transform_indices = @transform_6, window_bounds = array<i64: 1, 128>}, {transform_indices = @transform_7, window_bounds = array<i64: 8, 16, 128>}]} {
    %c0 = arith.constant 0 : index
    %c0_0 = arith.constant 0 : index
    %c0_1 = arith.constant 0 : index
    %0 = vector.load %arg1[%c0, %c0_0, %c0_1] : memref<8x16x128xbf16, #tpu.memory_space<vmem>>, vector<8x16x128xbf16>
    %1 = vector.shape_cast %0 : vector<8x16x128xbf16> to vector<128x128xbf16>
    %c0_2 = arith.constant 0 : index
    %c0_3 = arith.constant 0 : index
    %2 = vector.load %arg2[%c0_2, %c0_3] : memref<128x128xbf16, #tpu.memory_space<vmem>>, vector<128x128xbf16>
    %cst = arith.constant dense<0.000000e+00> : vector<128x128xf32>
    %3 = tpu.matmul %1, %2, %cst {dimension_numbers = #tpu.dot_dimension_numbers<[1], [0], [0], [1], [0, 0, 1, 1], [], []>} : vector<128x128xbf16>, vector<128x128xbf16>, vector<128x128xf32> -> vector<128x128xf32>
    %4 = vector.shape_cast %3 : vector<128x128xf32> to vector<8x16x128xf32>
    %c0_4 = arith.constant 0 : index
    %c0_5 = arith.constant 0 : index
    %5 = vector.load %arg5[%c0_4, %c0_5] : memref<1x128xf32, #tpu.memory_space<vmem>>, vector<1x128xf32>
    %6 = vector.shape_cast %5 : vector<1x128xf32> to vector<1x1x128xf32>
    %7 = vector.broadcast %6 : vector<1x1x128xf32> to vector<8x16x128xf32>
    %8 = arith.addf %4, %7 : vector<8x16x128xf32>
    %cst_6 = arith.constant 0.000000e+00 : f32
    %9 = vector.broadcast %cst_6 : f32 to vector<8x16x128xf32>
    %10 = arith.maximumf %8, %9 : vector<8x16x128xf32>
    %11 = arith.truncf %10 : vector<8x16x128xf32> to vector<8x16x128xbf16>
    %cst_7 = arith.constant 0.000000e+00 : bf16
    %12 = vector.broadcast %cst_7 : bf16 to vector<8x1x128xbf16>
    %13 = vector.extract_strided_slice %11 {offsets = [0, 0, 0], sizes = [8, 15, 128], strides = [1, 1, 1]} : vector<8x16x128xbf16> to vector<8x15x128xbf16>
    %14 = tpu.concatenate %12, %13 in 1 : vector<8x1x128xbf16>, vector<8x15x128xbf16> -> vector<8x16x128xbf16>
    %15 = vector.extract_strided_slice %11 {offsets = [0, 1, 0], sizes = [8, 15, 128], strides = [1, 1, 1]} : vector<8x16x128xbf16> to vector<8x15x128xbf16>
    %16 = tpu.concatenate %15, %12 in 1 : vector<8x15x128xbf16>, vector<8x1x128xbf16> -> vector<8x16x128xbf16>
    %17 = vector.shape_cast %11 : vector<8x16x128xbf16> to vector<128x128xbf16>
    %c1 = arith.constant 1 : index
    %c0_8 = arith.constant 0 : index
    %c0_9 = arith.constant 0 : index
    %18 = vector.load %arg3[%c1, %c0_8, %c0_9] : memref<3x128x128xbf16, #tpu.memory_space<vmem>>, vector<1x128x128xbf16>
    %19 = vector.shape_cast %18 : vector<1x128x128xbf16> to vector<128x128xbf16>
    %cst_10 = arith.constant dense<0.000000e+00> : vector<128x128xf32>
    %20 = tpu.matmul %17, %19, %cst_10 {dimension_numbers = #tpu.dot_dimension_numbers<[1], [0], [0], [1], [0, 0, 1, 1], [], []>} : vector<128x128xbf16>, vector<128x128xbf16>, vector<128x128xf32> -> vector<128x128xf32>
    %21 = vector.shape_cast %14 : vector<8x16x128xbf16> to vector<128x128xbf16>
    %c0_11 = arith.constant 0 : index
    %c0_12 = arith.constant 0 : index
    %c0_13 = arith.constant 0 : index
    %22 = vector.load %arg3[%c0_11, %c0_12, %c0_13] : memref<3x128x128xbf16, #tpu.memory_space<vmem>>, vector<1x128x128xbf16>
    %23 = vector.shape_cast %22 : vector<1x128x128xbf16> to vector<128x128xbf16>
    %cst_14 = arith.constant dense<0.000000e+00> : vector<128x128xf32>
    %24 = tpu.matmul %21, %23, %cst_14 {dimension_numbers = #tpu.dot_dimension_numbers<[1], [0], [0], [1], [0, 0, 1, 1], [], []>} : vector<128x128xbf16>, vector<128x128xbf16>, vector<128x128xf32> -> vector<128x128xf32>
    %25 = arith.addf %20, %24 : vector<128x128xf32>
    %26 = vector.shape_cast %16 : vector<8x16x128xbf16> to vector<128x128xbf16>
    %c2 = arith.constant 2 : index
    %c0_15 = arith.constant 0 : index
    %c0_16 = arith.constant 0 : index
    %27 = vector.load %arg3[%c2, %c0_15, %c0_16] : memref<3x128x128xbf16, #tpu.memory_space<vmem>>, vector<1x128x128xbf16>
    %28 = vector.shape_cast %27 : vector<1x128x128xbf16> to vector<128x128xbf16>
    %cst_17 = arith.constant dense<0.000000e+00> : vector<128x128xf32>
    %29 = tpu.matmul %26, %28, %cst_17 {dimension_numbers = #tpu.dot_dimension_numbers<[1], [0], [0], [1], [0, 0, 1, 1], [], []>} : vector<128x128xbf16>, vector<128x128xbf16>, vector<128x128xf32> -> vector<128x128xf32>
    %30 = arith.addf %25, %29 : vector<128x128xf32>
    %31 = vector.shape_cast %30 : vector<128x128xf32> to vector<8x16x128xf32>
    %c0_18 = arith.constant 0 : index
    %c0_19 = arith.constant 0 : index
    %32 = vector.load %arg6[%c0_18, %c0_19] : memref<1x128xf32, #tpu.memory_space<vmem>>, vector<1x128xf32>
    %33 = vector.shape_cast %32 : vector<1x128xf32> to vector<1x1x128xf32>
    %34 = vector.broadcast %33 : vector<1x1x128xf32> to vector<8x16x128xf32>
    %35 = arith.addf %31, %34 : vector<8x16x128xf32>
    %cst_20 = arith.constant 0.000000e+00 : f32
    %36 = vector.broadcast %cst_20 : f32 to vector<8x16x128xf32>
    %37 = arith.maximumf %35, %36 : vector<8x16x128xf32>
    %38 = arith.truncf %37 : vector<8x16x128xf32> to vector<8x16x128xbf16>
    %39 = vector.shape_cast %38 : vector<8x16x128xbf16> to vector<128x128xbf16>
    %c0_21 = arith.constant 0 : index
    %c0_22 = arith.constant 0 : index
    %40 = vector.load %arg4[%c0_21, %c0_22] : memref<128x128xbf16, #tpu.memory_space<vmem>>, vector<128x128xbf16>
    %cst_23 = arith.constant dense<0.000000e+00> : vector<128x128xf32>
    %41 = tpu.matmul %39, %40, %cst_23 {dimension_numbers = #tpu.dot_dimension_numbers<[1], [0], [0], [1], [0, 0, 1, 1], [], []>} : vector<128x128xbf16>, vector<128x128xbf16>, vector<128x128xf32> -> vector<128x128xf32>
    %42 = vector.shape_cast %41 : vector<128x128xf32> to vector<8x16x128xf32>
    %c0_24 = arith.constant 0 : index
    %c0_25 = arith.constant 0 : index
    %43 = vector.load %arg7[%c0_24, %c0_25] : memref<1x128xf32, #tpu.memory_space<vmem>>, vector<1x128xf32>
    %44 = vector.shape_cast %43 : vector<1x128xf32> to vector<1x1x128xf32>
    %45 = vector.broadcast %44 : vector<1x1x128xf32> to vector<8x16x128xf32>
    %46 = arith.addf %42, %45 : vector<8x16x128xf32>
    %47 = arith.extf %0 : vector<8x16x128xbf16> to vector<8x16x128xf32>
    %48 = arith.addf %46, %47 : vector<8x16x128xf32>
    %cst_26 = arith.constant 0.000000e+00 : f32
    %49 = vector.broadcast %cst_26 : f32 to vector<8x16x128xf32>
    %50 = arith.maximumf %48, %49 : vector<8x16x128xf32>
    %51 = arith.truncf %50 : vector<8x16x128xf32> to vector<8x16x128xbf16>
    %c0_27 = arith.constant 0 : index
    %c0_28 = arith.constant 0 : index
    %c0_29 = arith.constant 0 : index
    %52 = vector.load %arg8[%c0_27, %c0_28, %c0_29] : memref<8x16x128xbf16, #tpu.memory_space<vmem>>, vector<8x16x128xbf16>
    tpu.vector_store %arg8[%c0_27, %c0_28, %c0_29], %51 {strides = array<i32>} : memref<8x16x128xbf16, #tpu.memory_space<vmem>>, vector<8x16x128xbf16>,
    return
  }
  func.func @transform_0(%arg0: i32) -> (i32, i32, i32) {
    %c0_i32 = arith.constant 0 : i32
    %c0_i32_0 = arith.constant 0 : i32
    %c0_i32_1 = arith.constant 0 : i32
    return %arg0, %c0_i32, %c0_i32_0 : i32, i32, i32
  }
  func.func @transform_1(%arg0: i32) -> (i32, i32) {
    %c0_i32 = arith.constant 0 : i32
    %c0_i32_0 = arith.constant 0 : i32
    %c0_i32_1 = arith.constant 0 : i32
    return %c0_i32, %c0_i32_0 : i32, i32
  }
  func.func @transform_2(%arg0: i32) -> (i32, i32, i32) {
    %c0_i32 = arith.constant 0 : i32
    %c0_i32_0 = arith.constant 0 : i32
    %c0_i32_1 = arith.constant 0 : i32
    %c0_i32_2 = arith.constant 0 : i32
    return %c0_i32, %c0_i32_0, %c0_i32_1 : i32, i32, i32
  }
  func.func @transform_3(%arg0: i32) -> (i32, i32) {
    %c0_i32 = arith.constant 0 : i32
    %c0_i32_0 = arith.constant 0 : i32
    %c0_i32_1 = arith.constant 0 : i32
    return %c0_i32, %c0_i32_0 : i32, i32
  }
  func.func @transform_4(%arg0: i32) -> (i32, i32) {
    %c0_i32 = arith.constant 0 : i32
    %c0_i32_0 = arith.constant 0 : i32
    %c0_i32_1 = arith.constant 0 : i32
    return %c0_i32, %c0_i32_0 : i32, i32
  }
  func.func @transform_5(%arg0: i32) -> (i32, i32) {
    %c0_i32 = arith.constant 0 : i32
    %c0_i32_0 = arith.constant 0 : i32
    %c0_i32_1 = arith.constant 0 : i32
    return %c0_i32, %c0_i32_0 : i32, i32
  }
  func.func @transform_6(%arg0: i32) -> (i32, i32) {
    %c0_i32 = arith.constant 0 : i32
    %c0_i32_0 = arith.constant 0 : i32
    %c0_i32_1 = arith.constant 0 : i32
    return %c0_i32, %c0_i32_0 : i32, i32
  }
  func.func @transform_7(%arg0: i32) -> (i32, i32, i32) {
    %c0_i32 = arith.constant 0 : i32
    %c0_i32_0 = arith.constant 0 : i32
    %c0_i32_1 = arith.constant 0 : i32
    return %arg0, %c0_i32, %c0_i32_0 : i32, i32, i32
  }
}

</mosaic_0001>

<bundles_post_ra>
// kernel: tpu_custom_call.1
= control target key start
LH: loop header
LB: loop body
LE: loop exit
PB: predicated region body
PF: predicated region fallthrough
CT: control target
= control target key end

     0   :  { %12 = vsyncpa [#allocation3], 0  ;;  %s3015_s0 = inlined_call_operand.hbm [shape: bf16[32,16,128], index: 0, kind: input, shape index: {}]   ;;  %s3016_s1 = inlined_call_operand.hbm [shape: bf16[128,128], index: 1, kind: input, shape index: {}]   ;;  %s3017_s2 = inlined_call_operand.hbm [shape: bf16[3,128,128], index: 2, kind: input, shape index: {}]   ;;  %s3018_s3 = inlined_call_operand.hbm [shape: bf16[128,128], index: 3, kind: input, shape index: {}]   ;;  %s3019_s4 = inlined_call_operand.vmem [shape: f32[1,128], index: 4, kind: input, shape index: {}]   ;;  %s3020_s5 = inlined_call_operand.vmem [shape: f32[1,128], index: 5, kind: input, shape index: {}]   ;;  %s3021_s6 = inlined_call_operand.vmem [shape: f32[1,128], index: 6, kind: input, shape index: {}]   ;;  %s3022_s7 = inlined_call_operand.hbm [shape: bf16[32,16,128], index: 7, kind: output, shape index: {}]  }
   0x1   :  { %14 = vsyncpa [#allocation3 + $0x1], 0 }
   0x2   :  { %15 = vsyncpa [#allocation6], 0 }
   0x3   :  { %16 = vsyncpa [#allocation9], 0 }
   0x4   :  { %17 = vsyncpa [#allocation4], 0 }
   0x5   :  { %19 = vsyncpa [#allocation4 + $0x1], 0  ;;  %s2508_s24 = smov 0   ;;  %s2510_s25 = smov 0  }
   0x6   :  { %s2512_s26 = smov 0   ;;  %s2514_s27 = smov 0  }
   0x7 LB: > { %s2529_s28 = sadd.s32 4294967295, %s2457_s27   ;;  %s1704_s29 = sadd.s32 4294967294, %s2457_s27   ;;  %s2457_s27 = sphi %s2514_s27, %s3051_s27   ;;  %s2453_s26 = sphi %s2512_s26, %s3050_s26   ;;  %s2449_s25 = sphi %s2510_s25, %s3049_s25   ;;  %s2445_s24 = sphi %s2508_s24, %s3048_s24  }
   0x8   : > { %p45_p0 = scmp.ne.s32.totalorder %s2449_s25, %s2445_s24  ;;  %p3023_p1 = scmp.eq.s32.totalorder %s2529_s28, 0 }
   0x9   : > { %p201_p3 = scmp.eq.s32.totalorder %s1704_s29, 3  ;;  %p1705_p5 = scmp.ge.s32.totalorder %s2457_s27, 1 }
   0xa   : > { %p2538_p4 = por %p3023_p1, %p45_p0  ;;  %p208_p7 = scmp.lt.s32.totalorder %s2457_s27, 5 }
   0xb   : > { %p2543_p6 = por %p201_p3, %p45_p0  ;;  %s2459_s10 = smov [#allocation5]  }
   0xc   : > { %s3027_s30 = scalar_select %p2538_p4, 1, 0 }
   0xd   : > { %s3028_s8 = scalar_select %p2543_p6, 1, 0 }
   0xe   : > { %p2548_p8 = pnand %p1705_p5, %p208_p7  ;;  %s220_s11 = sshll.u32 %s2459_s10, 4  ;;  %s2552_s11 = int_to_ptr.vmem [resolvable:$true] %s220_s11 }
   0xf   : > { %3029 = sst [smem:[#allocation15_spill]] %s3028_s8  ;;  %s2460_s13 = smov [#allocation7]  }
  0x10   : > { %s3030_s9 = scalar_select %p2548_p8, 1, 0 }
  0x11   : > { %p2148_p9 = pneg %p2548_p8  ;;  %s233_s14 = sshll.u32 %s2460_s13, 4  ;;  %s2562_s14 = int_to_ptr.vmem [resolvable:$true] %s233_s14 }
  0x12   : > { %s2461_s15 = smov [#allocation8]   ;;  %s2269_s19 = scalar_lea.hbm %s3016_s1, 1024 }
  0x13   : > { %p2558_p10 = pnand %p2148_p9, %p3023_p1  ;;  %s2564_s16 = sshll.u32 %s2461_s15, 4  ;;  %s247_s16 = int_to_ptr.vmem [resolvable:$true] %s2564_s16 }
  0x14   : > { %p2270_p11 = scmp.ne.s32.totalorder %s3016_s1, %s2269_s19  ;;  %p2276_p3 = scmp.lt.u32.totalorder %s2269_s19, %s3016_s1 }
  0x15   : > { %p2574_p12 = pneg %p2558_p10 }
  0x17   : > { %p2272_p13 = pnand %p2574_p12, %p2270_p11 }
  0x19   : > { %p2273_p0 = pneg %p2272_p13 }
  0x1b   : > { %p2278_p5 = pnand %p2276_p3, %p2273_p0 }
  0x1d   : > { %2281 = shalt.err (!%p2278_p5)
}
  0x1e   : > { %s2282_s10 = scalar_lea.vmem %s2552_s11, 1024  ;;  %p2290_p2 = scmp.lt.s32.totalorder %s2552_s11, %s2552_s11 }
  0x1f   : > { %p2283_p7 = scmp.ne.s32.totalorder %s2552_s11, %s2282_s10  ;;  %p2291_p6 = scmp.lt.s32.totalorder %s2282_s10, %s2282_s10 }
  0x21   : > { %p2285_p9 = pnand %p2283_p7, %p2574_p12  ;;  %p2292_p11 = por %p2291_p6, %p2290_p2 }
  0x23   : > { %p2286_p1 = pneg %p2285_p9 }
  0x25   : > { %p2293_p13 = pnand %p2292_p11, %p2286_p1 }
  0x27   : > { %2296 = shalt.err (!%p2293_p13)
}
  0x28   : > { %s2462_s13 = smov 64   ;;  %s2463_s15 = smov 4  }
  0x29   : > { %2151 = dma.hbm_to_vmem [thread:$0]  (!%p2558_p10), %s3016_s1, 1024, %s2552_s11, [#allocation6], %s2462_s13, %s2462_s13, %s2463_s15  }
  0x2a   : > { %s2297_s21 = scalar_lea.hbm %s3017_s2, 3072 }
  0x2b   : > { %p2298_p1 = scmp.ne.s32.totalorder %s3017_s2, %s2297_s21  ;;  %p2304_p0 = scmp.lt.u32.totalorder %s2297_s21, %s3017_s2 }
  0x2d   : > { %p2300_p2 = pnand %p2298_p1, %p2574_p12 }
  0x2f   : > { %p2301_p6 = pneg %p2300_p2 }
  0x31   : > { %p2306_p3 = pnand %p2304_p0, %p2301_p6 }
  0x33   : > { %2309 = shalt.err (!%p2306_p3)
}
  0x34   : > { %s2310_s11 = scalar_lea.vmem %s2562_s14, 3072  ;;  %p2318_p11 = scmp.lt.s32.totalorder %s2562_s14, %s2562_s14 }
  0x35   : > { %p2311_p5 = scmp.ne.s32.totalorder %s2562_s14, %s2310_s11  ;;  %p2319_p13 = scmp.lt.s32.totalorder %s2310_s11, %s2310_s11 }
  0x37   : > { %p2313_p7 = pnand %p2311_p5, %p2574_p12  ;;  %p2320_p1 = por %p2319_p13, %p2318_p11 }
  0x39   : > { %p2314_p9 = pneg %p2313_p7 }
  0x3b   : > { %p2321_p2 = pnand %p2320_p1, %p2314_p9 }
  0x3d   : > { %2324 = shalt.err (!%p2321_p2)
}
  0x3e   : > { %2154 = dma.hbm_to_vmem [thread:$0]  (!%p2558_p10), %s3017_s2, 3072, %s2562_s14, [#allocation6], %s2462_s13, %s2462_s13, %s2463_s15  }
  0x3f   : > { %s2325_s20 = scalar_lea.hbm %s3018_s3, 1024 }
  0x40   : > { %p2326_p6 = scmp.ne.s32.totalorder %s3018_s3, %s2325_s20  ;;  %p2332_p5 = scmp.lt.u32.totalorder %s2325_s20, %s3018_s3 }
  0x42   : > { %p2328_p0 = pnand %p2326_p6, %p2574_p12 }
  0x44   : > { %p2329_p3 = pneg %p2328_p0 }
  0x46   : > { %p2334_p7 = pnand %p2332_p5, %p2329_p3 }
  0x48   : > { %2337 = shalt.err (!%p2334_p7)
}
  0x49   : > { %s2338_s11 = scalar_lea.vmem %s247_s16, 1024  ;;  %p2346_p1 = scmp.lt.s32.totalorder %s247_s16, %s247_s16 }
  0x4a   : > { %p2339_p9 = scmp.ne.s32.totalorder %s247_s16, %s2338_s11  ;;  %p2347_p2 = scmp.lt.s32.totalorder %s2338_s11, %s2338_s11 }
  0x4c   : > { %p2341_p11 = pnand %p2339_p9, %p2574_p12  ;;  %p2348_p4 = por %p2347_p2, %p2346_p1 }
  0x4e   : > { %p2342_p13 = pneg %p2341_p11 }
  0x50   : > { %p2349_p8 = pnand %p2348_p4, %p2342_p13 }
  0x52   : > { %2352 = shalt.err (!%p2349_p8)
}
  0x53   : > { %2157 = dma.hbm_to_vmem [thread:$0]  (!%p2558_p10), %s3018_s3, 1024, %s247_s16, [#allocation9], %s2462_s13, %s2462_s13, %s2463_s15  }
  0x54   : > { %s2647_s22 = sadd.s32 1, %s2457_s27   ;;  %s32_s17 = sadd.s32 1, %s2453_s26 }
  0x55   : > { %s29_s12 = ssub.s32 %s2457_s27, %s2647_s22  ;;  %p39_p8 = scmp.ne.s32.totalorder %s2453_s26, %s2449_s25 }
  0x56   : > { %p30_p4 = scmp.eq.s32.totalorder %s29_s12, 0  ;;  %p40_p12 = scmp.eq.s32.totalorder %s2457_s27, 0 }
  0x57   : > { %p2169_p6 = scmp.lt.s32.totalorder %s2457_s27, 4  ;;  %p3033_p3 = scmp.eq.s32.totalorder %s2529_s28, 3 }
  0x58   : > { %s2657_s18 = scalar_select %p30_p4, %s2453_s26, %s32_s17  }
  0x59   : > { %p41_p0 = por %p40_p12, %p39_p8  ;;  %p2661_p5 = por %p3033_p3, %p39_p8 }
  0x5a   : > { %s269_s20 = sand.u32 1, %s2453_s26   ;;  %s1794_s21 = sshll.u32 %s2457_s27, 10 }
  0x5b   : > { %s1710_s16 = sshll.u32 %s269_s20, 6  ;;  %s2670_s10 = scalar_lea.hbm %s3015_s0, %s1794_s21 }
  0x5c   : > { %s273_s11 = scalar_lea.vmem [#allocation2], %s1710_s16  ;;  %p2672_p10 = pnand %p2169_p6, %p41_p0 }
  0x5d   : > { %s281_s14 = sshll.u32 %s273_s11, 4  ;;  %s2678_s12 = scalar_lea.sflag [#allocation3], %s269_s20  ;;  %s2676_s14 = int_to_ptr.vmem [resolvable:$true] %s281_s14 }
  0x5e   : > { %s2353_s17 = scalar_lea.hbm %s2670_s10, 1024  ;;  %p2355_p9 = pneg %p2672_p10 }
  0x5f   : > { %p2354_p7 = scmp.ne.s32.totalorder %s2670_s10, %s2353_s17  ;;  %s2358_s23 = scalar_lea.hbm %s3015_s0, 4096 }
  0x60   : > { %p2359_p1 = scmp.lt.u32.totalorder %s2670_s10, %s3015_s0  ;;  %p2360_p2 = scmp.lt.u32.totalorder %s2358_s23, %s2353_s17 }
  0x61   : > { %p2356_p11 = pnand %p2355_p9, %p2354_p7  ;;  %p2362_p8 = scmp.lt.u32.totalorder %s2353_s17, %s2670_s10 }
  0x62   : > { %p2361_p4 = por %p2360_p2, %p2359_p1 }
  0x63   : > { %p2357_p13 = pneg %p2356_p11 }
  0x64   : > { %p2363_p12 = por %p2362_p8, %p2361_p4 }
  0x66   : > { %p2364_p6 = pnand %p2363_p12, %p2357_p13 }
  0x68   : > { %2367 = shalt.err (!%p2364_p6)
}
  0x69   : > { %s2368_s20 = scalar_lea.vmem %s2676_s14, 1024  ;;  %s2464_s21 = smov [#allocation2]  }
  0x6a   : > { %p2369_p0 = scmp.ne.s32.totalorder %s2676_s14, %s2368_s20  ;;  %s2373_s16 = sshll.u32 %s2464_s21, 4  ;;  %s2374_s16 = int_to_ptr.vmem [resolvable:$false] %s2373_s16 }
  0x6b   : > { %s2375_s29 = scalar_lea.vmem %s2374_s16, 2048  ;;  %p2376_p11 = scmp.lt.s32.totalorder %s2676_s14, %s2374_s16 }
  0x6c   : > { %p2371_p3 = pnand %p2369_p0, %p2355_p9  ;;  %p2377_p1 = scmp.lt.s32.totalorder %s2375_s29, %s2368_s20 }
  0x6e   : > { %p2372_p7 = pneg %p2371_p3  ;;  %p2378_p2 = por %p2377_p1, %p2376_p11 }
  0x70   : > { %p2379_p4 = pnand %p2378_p2, %p2372_p7 }
  0x72   : > { %2382 = shalt.err (!%p2379_p4)
}
  0x73   : > { %2161 = dma.hbm_to_vmem [thread:$0]  (!%p2672_p10), %s2670_s10, 1024, %s2676_s14, %s2678_s12, %s2462_s13, %s2462_s13, %s2463_s15  }
  0x74   : > { %p3036_p9 = scmp.ne.s32.totalorder %s3030_s9, 0 }
  0x75   : > { %s2712_s17 = sand.u32 (!%p3036_p9), 1, %s2449_s25   ;;  %p3037_p13 = scmp.ne.s32.totalorder (!%p3036_p9), %s3027_s30, 0 }
  0x76   : > { %293 = sbr.rel (%p3036_p9) target bundleno = 943 (0x3af), region = 48  ;;  %s1715_s23 = sshll.u32 (!%p3036_p9), %s2712_s17, 6 }
  0x77   : > { %s296_s11 = scalar_lea.sflag (!%p3036_p9), [#allocation3], %s2712_s17  ;;  %s2718_s8 = scalar_lea.vmem (!%p3036_p9), [#allocation2], %s1715_s23 }
  0x7d   : > { %2428 = dma.done.wait (%p3037_p13), %s296_s11, 1024  }
  0x7e   : > { %2430 = vsyncadd (%p3037_p13), %s296_s11, 4294966272  ;;  %p3038_p10 = scmp.eq.s32.totalorder %s2529_s28, 0 }
  0x80   : > { %2432 = dma.done.wait (%p3038_p10), [#allocation6], 4096   ;;  %p3039_p8 = pmov %p3038_p10 }
  0x82   : > { %2434 = vsyncadd (%p3039_p8), [#allocation6], 4294963200  ;;  %p3040_p12 = pmov %p3039_p8 }
  0x83   : > { %p3041_p6 = pmov %p3039_p8 }
  0x84   : > { %2436 = dma.done.wait (%p3040_p12), [#allocation9], 1024  }
  0x85   : > { %2438 = vsyncadd (%p3041_p6), [#allocation9], 4294966272  ;;  %v2213_v0 = vld [vmem:[#allocation5] sm:$0xff]   ;;  %v2214_v1 = vld [vmem:[#allocation5 + $0x8] sm:$0xff]   ;;  %vm681_vm0 = vcmask 1040384   ;;  %vm716_vm3 = vcmask 1047552  }
  0x86   : > { %1940 = vmatprep.subr.bf16.mxu0 %v2213_v0  ;;  %v2215_v2 = vld [vmem:[#allocation5 + $0x10] sm:$0xff]   ;;  %v2216_v3 = vld [vmem:[#allocation5 + $0x18] sm:$0xff]   ;;  %v2733_v4 = vld [vmem:[%s2718_s8] sm:$0xff]   ;;  %vm682_vm1 = vsmask.f32 256  ;;  %s2937_s12 = scalar_lea.vmem [#allocation10], %s1715_s23 }
  0x87   : > { %1941 = vmatpush3.bf16.msra.mxu0 %v2213_v0  ;;  %v2217_v5 = vld [vmem:[#allocation5 + $0x20] sm:$0xff]   ;;  %1956 = vmatprep.mubr.bf16.mxu0 %v2733_v4  ;;  %v2230_v7 = vld [vmem:[#allocation7 + $0x8] sm:$0xff]   ;;  %v2231_v9 = vld [vmem:[#allocation7 + $0x10] sm:$0xff]   ;;  %vm717_vm4 = vsmask.f32 7424  ;;  %s1812_s20 = sshll.u32 %s2529_s28, 10 }
  0x88   : > { %1942 = vmatprep.subr.bf16.mxu0 %v2214_v1  ;;  %v2229_v6 = vld [vmem:[#allocation7] sm:$0xff]   ;;  %v2218_v8 = vld [vmem:[#allocation5 + $0x28] sm:$0xff]   ;;  %v2232_v10 = vld [vmem:[#allocation7 + $0x18] sm:$0xff]   ;;  %s1602_s21 = sshll.u32 %s2937_s12, 4  ;;  %s2968_s23 = scalar_lea.hbm %s3022_s7, %s1812_s20  ;;  %s2970_s21 = int_to_ptr.vmem [resolvable:$true] %s1602_s21 }
  0x89   : > { %1972 = vmatprep.subr.bf16.mxu1 %v2229_v6  ;;  %v2219_v11 = vld [vmem:[#allocation5 + $0x30] sm:$0xff]   ;;  %v2220_v12 = vld [vmem:[#allocation5 + $0x38] sm:$0xff]   ;;  %v2737_v13 = vld [vmem:[%s2718_s8 + $0x8] sm:$0xff]   ;;  %s1588_s28 = scalar_lea.sflag [#allocation4], %s2712_s17  ;;  %s2383_s11 = scalar_lea.vmem %s2970_s21, 1024 }
  0x8a   : > { %1973 = vmatpush3.bf16.msra.mxu1 %v2229_v6  ;;  %v2740_v14 = vld [vmem:[%s2718_s8 + $0x10] sm:$0xff]   ;;  %v2745_v15 = vld [vmem:[%s2718_s8 + $0x18] sm:$0xff]   ;;  %v2748_v16 = vld [vmem:[%s2718_s8 + $0x20] sm:$0xff]   ;;  %p2384_p0 = scmp.ne.s32.totalorder %s2970_s21, %s2383_s11 }
  0x8b   : > { %1943 = vmatpush3.bf16.msra.mxu0 %v2214_v1  ;;  %1974 = vmatprep.subr.bf16.mxu1 %v2230_v7  ;;  %v2753_v17 = vld [vmem:[%s2718_s8 + $0x28] sm:$0xff]   ;;  %v2756_v18 = vld [vmem:[%s2718_s8 + $0x30] sm:$0xff]   ;;  %v2761_v19 = vld [vmem:[%s2718_s8 + $0x38] sm:$0xff]   ;;  %s2465_s8 = smov [#allocation10]  }
  0x8c   : > { %1944 = vmatprep.subr.bf16.mxu0 %v2215_v2  ;;  %v2233_v20 = vld [vmem:[#allocation7 + $0x20] sm:$0xff]   ;;  %v2234_v21 = vld [vmem:[#allocation7 + $0x28] sm:$0xff]   ;;  %v2235_v22 = vld [vmem:[#allocation7 + $0x30] sm:$0xff]   ;;  %p2385_p3 = pnand %p2384_p0, %p2661_p5  ;;  %s2387_s30 = sshll.u32 %s2465_s8, 4  ;;  %s2388_s30 = int_to_ptr.vmem [resolvable:$false] %s2387_s30 }
  0x8d   : > { %v2236_v23 = vld [vmem:[#allocation7 + $0x38] sm:$0xff]   ;;  %v2764_v24 = vld [vmem:[#allocation7 + $0x40] sm:$0xff]   ;;  %v2254_v26 = vld [vmem:[#allocation8 + $0x8] sm:$0xff]   ;;  %s2389_s9 = scalar_lea.vmem %s2388_s30, 2048  ;;  %p2390_p11 = scmp.lt.s32.totalorder %s2970_s21, %s2388_s30 }
  0x8e   : > { %1975 = vmatpush3.bf16.msra.mxu1 %v2230_v7  ;;  %v2253_v25 = vld [vmem:[#allocation8] sm:$0xff]   ;;  %v2255_v27 = vld [vmem:[#allocation8 + $0x10] sm:$0xff]   ;;  %v2256_v28 = vld [vmem:[#allocation8 + $0x18] sm:$0xff]   ;;  %p2386_p7 = pneg %p2385_p3  ;;  %p2391_p1 = scmp.lt.s32.totalorder %s2389_s9, %s2383_s11 }
  0x8f   : > { %1945 = vmatpush3.bf16.msra.mxu0 %v2215_v2  ;;  %1976 = vmatprep.subr.bf16.mxu1 %v2231_v9  ;;  %v2257_v29 = vld [vmem:[#allocation8 + $0x20] sm:$0xff]   ;;  %v2258_v30 = vld [vmem:[#allocation8 + $0x28] sm:$0xff]   ;;  %vm2790_vm2 = vmand %vm681_vm0, %vm682_vm1 }
  0x90   : > { %1946 = vmatprep.subr.bf16.mxu0 %v2216_v3  ;;  %v2770_v31 = vld [vmem:[%s3019_s4] ss:$0 sm:$0xff]  ;;  %v2248_v63 = vld [vmem:[#allocation7 + $0x98] sm:$0xff]   ;;  %vm2876_vm5 = vmand %vm716_vm3, %vm717_vm4  ;;  %p2392_p2 = por %p2391_p1, %p2390_p11 }
  0x92   : > { %1977 = vmatpush3.bf16.msra.mxu1 %v2231_v9  ;;  %p2393_p4 = pnand %p2392_p2, %p2386_p7 }
  0x93   : > { %1947 = vmatpush3.bf16.msra.mxu0 %v2216_v3  ;;  %1978 = vmatprep.subr.bf16.mxu1 %v2232_v10 }
  0x94   : > { %1948 = vmatprep.subr.bf16.mxu0 %v2217_v5 }
  0x96   : > { %1979 = vmatpush3.bf16.msra.mxu1 %v2232_v10  ;;  %v2238_v10 = vld [vmem:[#allocation7 + $0x48] sm:$0xff]  }
  0x97   : > { %1949 = vmatpush3.bf16.msra.mxu0 %v2217_v5  ;;  %1980 = vmatprep.subr.bf16.mxu1 %v2233_v20 }
  0x98   : > { %1950 = vmatprep.subr.bf16.mxu0 %v2218_v8 }
  0x9a   : > { %1981 = vmatpush3.bf16.msra.mxu1 %v2233_v20 }
  0x9b   : > { %1951 = vmatpush3.bf16.msra.mxu0 %v2218_v8  ;;  %1982 = vmatprep.subr.bf16.mxu1 %v2234_v21 }
  0x9c   : > { %1952 = vmatprep.subr.bf16.mxu0 %v2219_v11 }
  0x9e   : > { %1983 = vmatpush3.bf16.msra.mxu1 %v2234_v21 }
  0x9f   : > { %1953 = vmatpush3.bf16.msra.mxu0 %v2219_v11  ;;  %1984 = vmatprep.subr.bf16.mxu1 %v2235_v22 }
  0xa0   : > { %1954 = vmatprep.subr.bf16.mxu0 %v2220_v12 }
  0xa2   : > { %1985 = vmatpush3.bf16.msra.mxu1 %v2235_v22 }
  0xa3   : > { %1955 = vmatpush3.bf16.msra.mxu0 %v2220_v12  ;;  %1986 = vmatprep.subr.bf16.mxu1 %v2236_v23 }
  0xa4   : > { %2068 = vmatprep.subr.bf16.mxu0 %v2253_v25 }
  0xa6   : > { %1957 = vmatmul.mubr.bf16.vlgmr.msra.gmra.mrb[0].mxu0 %v2737_v13  ;;  %1987 = vmatpush3.bf16.msra.mxu1 %v2236_v23 }
  0xa7   : > { %1960 = vmatprep.mubr.bf16.mxu0 %v2740_v14  ;;  %2004 = vmatprep.subr.bf16.mxu1 %v2764_v24 }
  0xa8   : > { %2069 = vmatpush3.bf16.msra.mxu0 %v2253_v25 }
  0xa9   : > { %2070 = vmatprep.subr.bf16.mxu0 %v2254_v26 }
  0xac   : > { %2071 = vmatpush3.bf16.msra.mxu0 %v2254_v26 }
  0xad   : > { %2072 = vmatprep.subr.bf16.mxu0 %v2255_v27 }
  0xae   : > { %1961 = vmatmul.mubr.bf16.gmra.mrb[4].mxu0 %v2745_v15 }
  0xaf   : > { %1964 = vmatprep.mubr.bf16.mxu0 %v2748_v16 }
  0xb0   : > { %2073 = vmatpush3.bf16.msra.mxu0 %v2255_v27 }
  0xb1   : > { %2074 = vmatprep.subr.bf16.mxu0 %v2256_v28 }
  0xb4   : > { %2075 = vmatpush3.bf16.msra.mxu0 %v2256_v28 }
  0xb5   : > { %2076 = vmatprep.subr.bf16.mxu0 %v2257_v29 }
  0xb6   : > { %1965 = vmatmul.mubr.bf16.gmra.mrb[8].mxu0 %v2753_v17 }
  0xb7   : > { %1968 = vmatprep.mubr.bf16.mxu0 %v2756_v18 }
  0xb8   : > { %2077 = vmatpush3.bf16.msra.mxu0 %v2257_v29 }
  0xb9   : > { %2078 = vmatprep.subr.bf16.mxu0 %v2258_v30 }
  0xbc   : > { %2079 = vmatpush3.bf16.msra.mxu0 %v2258_v30 }
  0xbe   : > { %1969 = vmatmul.mubr.bf16.gmra.mrb[12].mxu0 %v2761_v19 }
 0x179   : > { %v1958_v32 = vpop.f32.mrb[0].mxu0 }
 0x17a   : > { %v579_v33 = vadd.f32 %v1958_v32, %v2770_v31  ;;  %v507_v34 = vpop.f32.mrb[1].mxu0 }
 0x17b   : > { %v577_v35 = vadd.f32 %v2770_v31, %v507_v34  ;;  %v1959_v36 = vpop.f32.mrb[2].mxu0 }
 0x17c   : > { %v580_v37 = vadd.f32 %v1959_v36, %v2770_v31  ;;  %v510_v38 = vpop.f32.mrb[3].mxu0  ;;  %v595_v40 = vmax.f32 %v579_v33, 0.0 }
 0x17d   : > { %v578_v39 = vadd.f32 %v2770_v31, %v510_v38  ;;  %v593_v42 = vmax.f32 %v577_v35, 0.0  ;;  %v2239_v35 = vld [vmem:[#allocation7 + $0x50] sm:$0xff]  }
 0x17e   : > { %v596_v41 = vmax.f32 %v580_v37, 0.0 }
 0x17f   : > { %v594_v43 = vmax.f32 %v578_v39, 0.0 }
 0x180   : > { %v2776_v44 = vpack.c.bf16 %v596_v41, %v595_v40 }
 0x181   : > { %v2778_v45 = vpack.c.bf16 %v594_v43, %v593_v42  ;;  %v1962_v46 = vpop.f32.mrb[4].mxu0 }
 0x182   : > { %v625_v47 = vshrl.u32 %v2776_v44, 16  ;;  %v583_v48 = vadd.f32 %v1962_v46, %v2770_v31  ;;  %v523_v49 = vpop.f32.mrb[5].mxu0  ;;  %v628_v50 = vshll.u32 %v2776_v44, 16 }
 0x183   : > { %v581_v51 = vadd.f32 %v2770_v31, %v523_v49  ;;  %v1963_v52 = vpop.f32.mrb[6].mxu0  ;;  %v618_v53 = vshrl.u32 %v2778_v45, 16  ;;  %v621_v60 = vshll.u32 %v2778_v45, 16 }
 0x184   : > { %v584_v54 = vadd.f32 %v1963_v52, %v2770_v31  ;;  %v526_v55 = vpop.f32.mrb[7].mxu0  ;;  %v627_v56 = vrot.slane %v625_v47, 7  ;;  %v694_v57 = vrot.slane %v628_v50, 1  ;;  %v599_v61 = vmax.f32 %v583_v48, 0.0  ;;  %v2240_v48 = vld [vmem:[#allocation7 + $0x58] sm:$0xff]  }
 0x185   : > { %v582_v58 = vadd.f32 %v2770_v31, %v526_v55  ;;  %v620_v59 = vrot.slane %v618_v53, 7  ;;  %v597_v2 = vmax.f32 %v581_v51, 0.0 }
 0x186   : > { %v600_v62 = vmax.f32 %v584_v54, 0.0  ;;  %v630_v0 = vor.u32 %v628_v50, %v627_v56  ;;  %v2794_v1 = vor.u32 %v694_v57, %v625_v47 }
 0x187   : > { %v598_v3 = vmax.f32 %v582_v58, 0.0  ;;  %v623_v5 = vor.u32 %v621_v60, %v620_v59 }
 0x188   : > { %v2798_v6 = vpack.c.bf16 %v600_v62, %v599_v61  ;;  %v685_v21 = vsel %vm2790_vm2, 0, %v630_v0 }
 0x189   : > { %v2800_v7 = vpack.c.bf16 %v598_v3, %v597_v2  ;;  %v1966_v8 = vpop.f32.mrb[8].mxu0  ;;  %v684_v9 = vsel %vm2790_vm2, 0, %v623_v5  ;;  %v2241_v5 = vld [vmem:[#allocation7 + $0x60] sm:$0xff]  }
 0x18a   : > { %v639_v11 = vshrl.u32 %v2798_v6, 16  ;;  %v587_v12 = vadd.f32 %v1966_v8, %v2770_v31  ;;  %v539_v20 = vpop.f32.mrb[9].mxu0  ;;  %1988 = vmatprep.mubr.bf16.mxu1 %v684_v9  ;;  %v642_v22 = vshll.u32 %v2798_v6, 16 }
 0x18b   : > { %v632_v23 = vshrl.u32 %v2800_v7, 16  ;;  %v585_v25 = vadd.f32 %v2770_v31, %v539_v20  ;;  %v1967_v26 = vpop.f32.mrb[10].mxu0  ;;  %1989 = vmatmul.mubr.bf16.vlgmr.msra.gmra.mrb[0].mxu1 %v685_v21  ;;  %v635_v34 = vshll.u32 %v2800_v7, 16 }
 0x18c   : > { %v588_v27 = vadd.f32 %v1967_v26, %v2770_v31  ;;  %2005 = vmatpush3.bf16.msra.mxu1 %v2764_v24  ;;  %v542_v28 = vpop.f32.mrb[11].mxu0  ;;  %v641_v29 = vrot.slane %v639_v11, 7  ;;  %v698_v30 = vrot.slane %v642_v22, 1  ;;  %v603_v36 = vmax.f32 %v587_v12, 0.0  ;;  %v2242_v26 = vld [vmem:[#allocation7 + $0x68] sm:$0xff]  }
 0x18d   : > { %v586_v32 = vadd.f32 %v2770_v31, %v542_v28  ;;  %2006 = vmatprep.subr.bf16.mxu1 %v2238_v10  ;;  %v634_v33 = vrot.slane %v632_v23, 7  ;;  %v601_v40 = vmax.f32 %v585_v25, 0.0 }
 0x18e   : > { %v604_v37 = vmax.f32 %v588_v27, 0.0  ;;  %v644_v38 = vor.u32 %v642_v22, %v641_v29  ;;  %v2817_v39 = vor.u32 %v698_v30, %v639_v11 }
 0x18f   : > { %v602_v41 = vmax.f32 %v586_v32, 0.0  ;;  %v637_v24 = vor.u32 %v635_v34, %v634_v33 }
 0x190   : > { %v2821_v42 = vpack.c.bf16 %v604_v37, %v603_v36  ;;  %2007 = vmatpush3.bf16.msra.mxu1 %v2238_v10  ;;  %v687_v52 = vsel %vm2790_vm2, 0, %v644_v38  ;;  %v2243_v37 = vld [vmem:[#allocation7 + $0x70] sm:$0xff]  }
 0x191   : > { %v2823_v43 = vpack.c.bf16 %v602_v41, %v601_v40  ;;  %v1970_v46 = vpop.f32.mrb[12].mxu0  ;;  %v686_v47 = vsel %vm2790_vm2, 0, %v637_v24  ;;  %2008 = vmatprep.subr.bf16.mxu1 %v2239_v35 }
 0x192   : > { %v653_v49 = vshrl.u32 %v2821_v42, 16  ;;  %v591_v50 = vadd.f32 %v1970_v46, %v2770_v31  ;;  %v555_v51 = vpop.f32.mrb[13].mxu0  ;;  %1992 = vmatprep.mubr.bf16.mxu1 %v686_v47  ;;  %v656_v54 = vshll.u32 %v2821_v42, 16  ;;  %v2244_v46 = vld [vmem:[#allocation7 + $0x78] sm:$0xff]  }
 0x193   : > { %v646_v55 = vshrl.u32 %v2823_v43, 16  ;;  %v589_v56 = vadd.f32 %v2770_v31, %v555_v51  ;;  %v1971_v57 = vpop.f32.mrb[14].mxu0  ;;  %1993 = vmatmul.mubr.bf16.gmra.mrb[4].mxu1 %v687_v52  ;;  %v649_v3 = vshll.u32 %v2823_v43, 16  ;;  %v2249_v51 = vld [vmem:[#allocation7 + $0xa0] sm:$0xff]   ;;  %v2250_v52 = vld [vmem:[#allocation7 + $0xa8] sm:$0xff]  }
 0x194   : > { %v592_v58 = vadd.f32 %v1971_v57, %v2770_v31  ;;  %2009 = vmatpush3.bf16.msra.mxu1 %v2239_v35  ;;  %v558_v59 = vpop.f32.mrb[15].mxu0  ;;  %v655_v61 = vrot.slane %v653_v49, 7  ;;  %v702_v62 = vrot.slane %v656_v54, 1  ;;  %v607_v8 = vmax.f32 %v591_v50, 0.0  ;;  %v2247_v50 = vld [vmem:[#allocation7 + $0x90] sm:$0xff]  }
 0x195   : > { %v590_v0 = vadd.f32 %v2770_v31, %v558_v59  ;;  %2010 = vmatprep.subr.bf16.mxu1 %v2240_v48  ;;  %v648_v2 = vrot.slane %v646_v55, 7  ;;  %v605_v12 = vmax.f32 %v589_v56, 0.0  ;;  %v696_v57 = vrot.slane %v635_v34, 1 }
 0x196   : > { %v608_v9 = vmax.f32 %v592_v58, 0.0  ;;  %v658_v10 = vor.u32 %v656_v54, %v655_v61  ;;  %v2839_v11 = vor.u32 %v702_v62, %v653_v49  ;;  %v2246_v49 = vld [vmem:[#allocation7 + $0x88] sm:$0xff]   ;;  %v2251_v54 = vld [vmem:[#allocation7 + $0xb0] sm:$0xff]   ;;  %v700_v59 = vrot.slane %v649_v3, 1 }
 0x197   : > { %v606_v20 = vmax.f32 %v590_v0, 0.0  ;;  %v651_v21 = vor.u32 %v649_v3, %v648_v2  ;;  %v2259_v62 = vld [vmem:[#allocation8 + $0x30] sm:$0xff]   ;;  %v2260_v0 = vld [vmem:[#allocation8 + $0x38] sm:$0xff]   ;;  %v1761_v2 = vld [vmem:[%s3020_s5] ss:$0 sm:$0xff] }
 0x198   : > { %v2843_v22 = vpack.c.bf16 %v608_v9, %v607_v8  ;;  %2011 = vmatpush3.bf16.msra.mxu1 %v2240_v48  ;;  %v689_v28 = vsel %vm2790_vm2, 0, %v658_v10  ;;  %v2245_v48 = vld [vmem:[#allocation7 + $0x80] sm:$0xff]   ;;  %v701_v34 = vor.u32 %v700_v59, %v646_v55  ;;  %2080 = vmatprep.subr.bf16.mxu0 %v2259_v62 }
 0x199   : > { %v2845_v31 = vpack.c.bf16 %v606_v20, %v605_v12  ;;  %v688_v25 = vsel %vm2790_vm2, 0, %v651_v21  ;;  %2012 = vmatprep.subr.bf16.mxu1 %v2241_v5  ;;  %2081 = vmatpush3.bf16.msra.mxu0 %v2259_v62 }
 0x19a   : > { %v667_v27 = vshrl.u32 %v2843_v22, 16  ;;  %1996 = vmatprep.mubr.bf16.mxu1 %v688_v25  ;;  %v670_v29 = vshll.u32 %v2843_v22, 16  ;;  %2082 = vmatprep.subr.bf16.mxu0 %v2260_v0 }
 0x19b   : > { %v660_v30 = vshrl.u32 %v2845_v31, 16  ;;  %1997 = vmatmul.mubr.bf16.gmra.mrb[8].mxu1 %v689_v28  ;;  %v663_v36 = vshll.u32 %v2845_v31, 16 }
 0x19c   : > { %2013 = vmatpush3.bf16.msra.mxu1 %v2241_v5  ;;  %v669_v32 = vrot.slane %v667_v27, 7  ;;  %v706_v33 = vrot.slane %v670_v29, 1 }
 0x19d   : > { %2014 = vmatprep.subr.bf16.mxu1 %v2242_v26  ;;  %v662_v35 = vrot.slane %v660_v30, 7  ;;  %2083 = vmatpush3.bf16.msra.mxu0 %v2260_v0 }
 0x19e   : > { %v672_v38 = vor.u32 %v670_v29, %v669_v32  ;;  %v2857_v40 = vor.u32 %v706_v33, %v667_v27 }
 0x19f   : > { %v665_v41 = vor.u32 %v663_v36, %v662_v35 }
 0x1a0   : > { %2015 = vmatpush3.bf16.msra.mxu1 %v2242_v26  ;;  %v691_v47 = vsel %vm2790_vm2, 0, %v672_v38 }
 0x1a1   : > { %v690_v24 = vsel %vm2790_vm2, 0, %v665_v41  ;;  %2016 = vmatprep.subr.bf16.mxu1 %v2243_v37 }
 0x1a2   : > { %2000 = vmatprep.mubr.bf16.mxu1 %v690_v24 }
 0x1a3   : > { %2001 = vmatmul.mubr.bf16.gmra.mrb[12].mxu1 %v691_v47 }
 0x1a4   : > { %2017 = vmatpush3.bf16.msra.mxu1 %v2243_v37  ;;  %2020 = vmatprep.mubr.bf16.mxu1 %v2778_v45  ;;  %v697_v45 = vor.u32 %v696_v57, %v632_v23  ;;  %v723_v23 = vsel %vm2876_vm5, %v701_v34, 0 }
 0x1a5   : > { %2018 = vmatprep.subr.bf16.mxu1 %v2244_v46 }
 0x1a6   : > { %v721_v58 = vsel %vm2876_vm5, %v697_v45, 0 }
 0x1a8   : > { %2019 = vmatpush3.bf16.msra.mxu1 %v2244_v46 }
 0x1a9   : > { %2036 = vmatprep.subr.bf16.mxu1 %v2245_v48 }
 0x1ab   : > { %2021 = vmatmul.mubr.bf16.vlgmr.msra.gmra.mrb[0].mxu1 %v2776_v44  ;;  %v692_v44 = vrot.slane %v621_v60, 1 }
 0x1ac   : > { %2037 = vmatpush3.bf16.msra.mxu1 %v2245_v48  ;;  %2024 = vmatprep.mubr.bf16.mxu1 %v2800_v7  ;;  %v722_v7 = vsel %vm2876_vm5, %v2817_v39, 0  ;;  %v726_v39 = vsel %vm2876_vm5, %v2857_v40, 0 }
 0x1ad   : > { %2038 = vmatprep.subr.bf16.mxu1 %v2246_v49 }
 0x1b0   : > { %2039 = vmatpush3.bf16.msra.mxu1 %v2246_v49 }
 0x1b1   : > { %2040 = vmatprep.subr.bf16.mxu1 %v2247_v50 }
 0x1b3   : > { %2025 = vmatmul.mubr.bf16.gmra.mrb[4].mxu1 %v2798_v6  ;;  %v693_v6 = vor.u32 %v692_v44, %v618_v53  ;;  %v720_v53 = vsel %vm2876_vm5, %v2794_v1, 0  ;;  %v704_v1 = vrot.slane %v663_v36, 1 }
 0x1b4   : > { %2041 = vmatpush3.bf16.msra.mxu1 %v2247_v50  ;;  %2028 = vmatprep.mubr.bf16.mxu1 %v2823_v43  ;;  %v724_v43 = vsel %vm2876_vm5, %v2839_v11, 0 }
 0x1b5   : > { %2042 = vmatprep.subr.bf16.mxu1 %v2248_v63  ;;  %v719_v60 = vsel %vm2876_vm5, %v693_v6, 0  ;;  %v705_v61 = vor.u32 %v704_v1, %v660_v30 }
 0x1b7   : > { %v725_v55 = vsel %vm2876_vm5, %v705_v61, 0 }
 0x1b8   : > { %2043 = vmatpush3.bf16.msra.mxu1 %v2248_v63 }
 0x1b9   : > { %2044 = vmatprep.subr.bf16.mxu1 %v2249_v51 }
 0x1bb   : > { %2029 = vmatmul.mubr.bf16.gmra.mrb[8].mxu1 %v2821_v42  ;;  %v2252_v42 = vld [vmem:[#allocation7 + $0xb8] sm:$0xff]  }
 0x1bc   : > { %2045 = vmatpush3.bf16.msra.mxu1 %v2249_v51  ;;  %2032 = vmatprep.mubr.bf16.mxu1 %v2845_v31 }
 0x1bd   : > { %2046 = vmatprep.subr.bf16.mxu1 %v2250_v52 }
 0x1c0   : > { %2047 = vmatpush3.bf16.msra.mxu1 %v2250_v52 }
 0x1c1   : > { %2048 = vmatprep.subr.bf16.mxu1 %v2251_v54 }
 0x1c3   : > { %2033 = vmatmul.mubr.bf16.gmra.mrb[12].mxu1 %v2843_v22 }
 0x1c4   : > { %2049 = vmatpush3.bf16.msra.mxu1 %v2251_v54  ;;  %2052 = vmatprep.mubr.bf16.mxu1 %v719_v60 }
 0x1c5   : > { %2050 = vmatprep.subr.bf16.mxu1 %v2252_v42 }
 0x1c8   : > { %2051 = vmatpush3.bf16.msra.mxu1 %v2252_v42 }
 0x1cb   : > { %2053 = vmatmul.mubr.bf16.vlgmr.msra.gmra.mrb[0].mxu1 %v720_v53 }
 0x1cc   : > { %2056 = vmatprep.mubr.bf16.mxu1 %v721_v58 }
 0x1d3   : > { %2057 = vmatmul.mubr.bf16.gmra.mrb[4].mxu1 %v722_v7 }
 0x1d4   : > { %2060 = vmatprep.mubr.bf16.mxu1 %v723_v23 }
 0x1db   : > { %2061 = vmatmul.mubr.bf16.gmra.mrb[8].mxu1 %v724_v43 }
 0x1dc   : > { %2064 = vmatprep.mubr.bf16.mxu1 %v725_v55 }
 0x1e3   : > { %2065 = vmatmul.mubr.bf16.gmra.mrb[12].mxu1 %v726_v39 }
 0x29e   : > { %v2054_v3 = vpop.f32.mrb[0].mxu1 }
 0x29f   : > { %v1237_v5 = vadd.f32 %v2054_v3, %v1761_v2  ;;  %v1149_v8 = vpop.f32.mrb[1].mxu1 }
 0x2a0   : > { %v1235_v9 = vadd.f32 %v1761_v2, %v1149_v8  ;;  %v2055_v10 = vpop.f32.mrb[2].mxu1  ;;  %v1461_v8 = vunpack.c.l.bf16 %v2737_v13 }
 0x2a1   : > { %v1238_v11 = vadd.f32 %v2055_v10, %v1761_v2  ;;  %v1152_v12 = vpop.f32.mrb[3].mxu1  ;;  %v1253_v21 = vmax.f32 %v1237_v5, 0.0  ;;  %v2919_v5 = vld [vmem:[%s3021_s6] ss:$0 sm:$0xff] }
 0x2a2   : > { %v1236_v20 = vadd.f32 %v1761_v2, %v1152_v12  ;;  %v1251_v31 = vmax.f32 %v1235_v9, 0.0  ;;  %v1459_v9 = vunpack.c.l.bf16 %v2733_v4  ;;  %v1462_v12 = vunpack.c.h.bf16 %v2737_v13 }
 0x2a3   : > { %v1254_v22 = vmax.f32 %v1238_v11, 0.0 }
 0x2a4   : > { %v1252_v25 = vmax.f32 %v1236_v20, 0.0  ;;  %v1460_v20 = vunpack.c.h.bf16 %v2733_v4 }
 0x2a5   : > { %v1268_v26 = vpack.c.bf16 %v1254_v22, %v1253_v21 }
 0x2a6   : > { %v1267_v27 = vpack.c.bf16 %v1252_v25, %v1251_v31  ;;  %v2058_v28 = vpop.f32.mrb[4].mxu1 }
 0x2a7   : > { %v1241_v29 = vadd.f32 %v2058_v28, %v1761_v2  ;;  %v1165_v30 = vpop.f32.mrb[5].mxu1 }
 0x2a8   : > { %v1239_v32 = vadd.f32 %v1761_v2, %v1165_v30  ;;  %v2059_v33 = vpop.f32.mrb[6].mxu1  ;;  %2084 = vmatprep.mubr.bf16.mxu0 %v1267_v27 }
 0x2a9   : > { %v1242_v35 = vadd.f32 %v2059_v33, %v1761_v2  ;;  %v1168_v36 = vpop.f32.mrb[7].mxu1  ;;  %2085 = vmatmul.mubr.bf16.vlgmr.msra.gmra.mrb[16].mxu0 %v1268_v26  ;;  %v1257_v38 = vmax.f32 %v1241_v29, 0.0 }
 0x2aa   : > { %v1240_v37 = vadd.f32 %v1761_v2, %v1168_v36  ;;  %v1255_v41 = vmax.f32 %v1239_v32, 0.0 }
 0x2ab   : > { %v1258_v40 = vmax.f32 %v1242_v35, 0.0  ;;  %v1465_v35 = vunpack.c.l.bf16 %v2745_v15 }
 0x2ac   : > { %v1256_v24 = vmax.f32 %v1240_v37, 0.0  ;;  %v1463_v37 = vunpack.c.l.bf16 %v2740_v14 }
 0x2ad   : > { %v1270_v46 = vpack.c.bf16 %v1258_v40, %v1257_v38 }
 0x2ae   : > { %v1269_v47 = vpack.c.bf16 %v1256_v24, %v1255_v41  ;;  %v2062_v48 = vpop.f32.mrb[8].mxu1  ;;  %v1466_v24 = vunpack.c.h.bf16 %v2745_v15 }
 0x2af   : > { %v1245_v49 = vadd.f32 %v2062_v48, %v1761_v2  ;;  %v1181_v50 = vpop.f32.mrb[9].mxu1 }
 0x2b0   : > { %v1243_v63 = vadd.f32 %v1761_v2, %v1181_v50  ;;  %v2063_v51 = vpop.f32.mrb[10].mxu1  ;;  %2088 = vmatprep.mubr.bf16.mxu0 %v1269_v47 }
 0x2b1   : > { %v1246_v52 = vadd.f32 %v2063_v51, %v1761_v2  ;;  %v1184_v44 = vpop.f32.mrb[11].mxu1  ;;  %2089 = vmatmul.mubr.bf16.gmra.mrb[20].mxu0 %v1270_v46  ;;  %v1261_v6 = vmax.f32 %v1245_v49, 0.0  ;;  %v1464_v49 = vunpack.c.h.bf16 %v2740_v14  ;;  %v1469_v14 = vunpack.c.l.bf16 %v2753_v17 }
 0x2b2   : > { %v1244_v54 = vadd.f32 %v1761_v2, %v1184_v44  ;;  %v1259_v42 = vmax.f32 %v1243_v63, 0.0 }
 0x2b3   : > { %v1262_v56 = vmax.f32 %v1246_v52, 0.0 }
 0x2b4   : > { %v1260_v60 = vmax.f32 %v1244_v54, 0.0 }
 0x2b5   : > { %v1272_v57 = vpack.c.bf16 %v1262_v56, %v1261_v6 }
 0x2b6   : > { %v1271_v45 = vpack.c.bf16 %v1260_v60, %v1259_v42  ;;  %v2066_v53 = vpop.f32.mrb[12].mxu1 }
 0x2b7   : > { %v1249_v58 = vadd.f32 %v2066_v53, %v1761_v2  ;;  %v1197_v59 = vpop.f32.mrb[13].mxu1 }
 0x2b8   : > { %v1247_v34 = vadd.f32 %v1761_v2, %v1197_v59  ;;  %v2067_v7 = vpop.f32.mrb[14].mxu1  ;;  %2092 = vmatprep.mubr.bf16.mxu0 %v1271_v45  ;;  %v1467_v45 = vunpack.c.l.bf16 %v2748_v16 }
 0x2b9   : > { %v1250_v23 = vadd.f32 %v2067_v7, %v1761_v2  ;;  %v1200_v1 = vpop.f32.mrb[15].mxu1  ;;  %2093 = vmatmul.mubr.bf16.gmra.mrb[24].mxu0 %v1272_v57  ;;  %v1265_v43 = vmax.f32 %v1249_v58, 0.0 }
 0x2ba   : > { %v1248_v61 = vadd.f32 %v1761_v2, %v1200_v1  ;;  %v1263_v39 = vmax.f32 %v1247_v34, 0.0  ;;  %v1470_v34 = vunpack.c.h.bf16 %v2753_v17 }
 0x2bb   : > { %v1266_v55 = vmax.f32 %v1250_v23, 0.0 }
 0x2bc   : > { %v1264_v62 = vmax.f32 %v1248_v61, 0.0  ;;  %v1468_v61 = vunpack.c.h.bf16 %v2748_v16 }
 0x2bd   : > { %v1274_v0 = vpack.c.bf16 %v1266_v55, %v1265_v43 }
 0x2be   : > { %v1273_v3 = vpack.c.bf16 %v1264_v62, %v1263_v39 }
 0x2c0   : > { %2096 = vmatprep.mubr.bf16.mxu0 %v1273_v3 }
 0x2c1   : > { %2097 = vmatmul.mubr.bf16.gmra.mrb[28].mxu0 %v1274_v0 }
 0x37c   : > { %v2086_v10 = vpop.f32.mrb[16].mxu0 }
 0x37d   : > { %v1445_v2 = vadd.f32 %v2086_v10, %v2919_v5  ;;  %v1373_v11 = vpop.f32.mrb[17].mxu0  ;;  %v1473_v10 = vunpack.c.l.bf16 %v2761_v19 }
 0x37e   : > { %v1443_v21 = vadd.f32 %v2919_v5, %v1373_v11  ;;  %v2087_v22 = vpop.f32.mrb[18].mxu0 }
 0x37f   : > { %v1477_v31 = vadd.f32 %v1461_v8, %v1445_v2  ;;  %v1446_v25 = vadd.f32 %v2087_v22, %v2919_v5  ;;  %v1376_v26 = vpop.f32.mrb[19].mxu0 }
 0x380   : > { %v1475_v27 = vadd.f32 %v1459_v9, %v1443_v21  ;;  %v1444_v28 = vadd.f32 %v2919_v5, %v1376_v26 }
 0x381   : > { %v1478_v29 = vadd.f32 %v1462_v12, %v1446_v25  ;;  %v1493_v32 = vmax.f32 %v1477_v31, 0.0  ;;  %v1471_v12 = vunpack.c.l.bf16 %v2756_v18  ;;  %v1474_v31 = vunpack.c.h.bf16 %v2761_v19 }
 0x382   : > { %v1476_v30 = vadd.f32 %v1460_v20, %v1444_v28  ;;  %v1491_v13 = vmax.f32 %v1475_v27, 0.0  ;;  %v1472_v28 = vunpack.c.h.bf16 %v2756_v18 }
 0x383   : > { %v1494_v33 = vmax.f32 %v1478_v29, 0.0 }
 0x384   : > { %v1492_v36 = vmax.f32 %v1476_v30, 0.0  ;;  %v2090_v4 = vpop.f32.mrb[20].mxu0 }
 0x385   : > { %v1821_v38 = vpack.c.bf16 %v1494_v33, %v1493_v32  ;;  %v1449_v40 = vadd.f32 %v2090_v4, %v2919_v5  ;;  %v1389_v41 = vpop.f32.mrb[21].mxu0 }
 0x386   : > { %v1816_v46 = vpack.c.bf16 %v1492_v36, %v1491_v13  ;;  %v1447_v47 = vadd.f32 %v2919_v5, %v1389_v41  ;;  %v2091_v48 = vpop.f32.mrb[22].mxu0 }
 0x387   : > { %1853 = vst [vmem:[%s2937_s12 + $0x8] sm:$0xff] %v1821_v38   ;;  %v1481_v50 = vadd.f32 %v1465_v35, %v1449_v40  ;;  %v1450_v63 = vadd.f32 %v2091_v48, %v2919_v5  ;;  %v1392_v51 = vpop.f32.mrb[23].mxu0 }
 0x388   : > { %1817 = vst [vmem:[%s2937_s12] sm:$0xff] %v1816_v46   ;;  %v1479_v52 = vadd.f32 %v1463_v37, %v1447_v47  ;;  %v1448_v15 = vadd.f32 %v2919_v5, %v1392_v51 }
 0x389   : > { %v1482_v44 = vadd.f32 %v1466_v24, %v1450_v63  ;;  %v1497_v6 = vmax.f32 %v1481_v50, 0.0 }
 0x38a   : > { %v1480_v54 = vadd.f32 %v1464_v49, %v1448_v15  ;;  %v1495_v42 = vmax.f32 %v1479_v52, 0.0 }
 0x38b   : > { %v1498_v56 = vmax.f32 %v1482_v44, 0.0 }
 0x38c   : > { %v1496_v60 = vmax.f32 %v1480_v54, 0.0  ;;  %v2094_v57 = vpop.f32.mrb[24].mxu0 }
 0x38d   : > { %v1831_v53 = vpack.c.bf16 %v1498_v56, %v1497_v6  ;;  %v1453_v58 = vadd.f32 %v2094_v57, %v2919_v5  ;;  %v1405_v59 = vpop.f32.mrb[25].mxu0 }
 0x38e   : > { %v1826_v7 = vpack.c.bf16 %v1496_v60, %v1495_v42  ;;  %v1451_v23 = vadd.f32 %v2919_v5, %v1405_v59  ;;  %v2095_v1 = vpop.f32.mrb[26].mxu0 }
 0x38f   : > { %1855 = vst [vmem:[%s2937_s12 + $0x18] sm:$0xff] %v1831_v53   ;;  %v1485_v43 = vadd.f32 %v1469_v14, %v1453_v58  ;;  %v1454_v55 = vadd.f32 %v2095_v1, %v2919_v5  ;;  %v1408_v39 = vpop.f32.mrb[27].mxu0 }
 0x390   : > { %1854 = vst [vmem:[%s2937_s12 + $0x10] sm:$0xff] %v1826_v7   ;;  %v1483_v62 = vadd.f32 %v1467_v45, %v1451_v23  ;;  %v1452_v0 = vadd.f32 %v2919_v5, %v1408_v39 }
 0x391   : > { %v1486_v3 = vadd.f32 %v1470_v34, %v1454_v55  ;;  %v1501_v9 = vmax.f32 %v1485_v43, 0.0 }
 0x392   : > { %v1484_v8 = vadd.f32 %v1468_v61, %v1452_v0  ;;  %v1499_v2 = vmax.f32 %v1483_v62, 0.0 }
 0x393   : > { %v1502_v17 = vmax.f32 %v1486_v3, 0.0 }
 0x394   : > { %v1500_v11 = vmax.f32 %v1484_v8, 0.0  ;;  %v2098_v16 = vpop.f32.mrb[28].mxu0 }
 0x395   : > { %v1841_v20 = vpack.c.bf16 %v1502_v17, %v1501_v9  ;;  %v1457_v21 = vadd.f32 %v2098_v16, %v2919_v5  ;;  %v1421_v22 = vpop.f32.mrb[29].mxu0 }
 0x396   : > { %v1836_v25 = vpack.c.bf16 %v1500_v11, %v1499_v2  ;;  %v1455_v26 = vadd.f32 %v2919_v5, %v1421_v22  ;;  %v2099_v27 = vpop.f32.mrb[30].mxu0 }
 0x397   : > { %1857 = vst [vmem:[%s2937_s12 + $0x28] sm:$0xff] %v1841_v20   ;;  %v1489_v29 = vadd.f32 %v1473_v10, %v1457_v21  ;;  %v1458_v30 = vadd.f32 %v2099_v27, %v2919_v5  ;;  %v1424_v32 = vpop.f32.mrb[31].mxu0 }
 0x398   : > { %1856 = vst [vmem:[%s2937_s12 + $0x20] sm:$0xff] %v1836_v25   ;;  %v1487_v33 = vadd.f32 %v1471_v12, %v1455_v26  ;;  %v1456_v35 = vadd.f32 %v2919_v5, %v1424_v32 }
 0x399   : > { %v1490_v13 = vadd.f32 %v1474_v31, %v1458_v30  ;;  %v1505_v36 = vmax.f32 %v1489_v29, 0.0 }
 0x39a   : > { %v1488_v19 = vadd.f32 %v1472_v28, %v1456_v35  ;;  %v1503_v18 = vmax.f32 %v1487_v33, 0.0 }
 0x39b   : > { %v1506_v4 = vmax.f32 %v1490_v13, 0.0 }
 0x39c   : > { %v1504_v37 = vmax.f32 %v1488_v19, 0.0 }
 0x39d   : > { %v1851_v38 = vpack.c.bf16 %v1506_v4, %v1505_v36 }
 0x39e   : > { %v1846_v5 = vpack.c.bf16 %v1504_v37, %v1503_v18 }
 0x39f   : > { %1859 = vst [vmem:[%s2937_s12 + $0x38] sm:$0xff] %v1851_v38  }
 0x3a0   : > { %1858 = vst [vmem:[%s2937_s12 + $0x30] sm:$0xff] %v1846_v5  }
 0x3a1   : > { %2396 = shalt.err (!%p2393_p4)
}
 0x3a2   : > { %s2397_s13 = scalar_lea.hbm %s2968_s23, 1024  ;;  %s2401_s14 = scalar_lea.hbm %s3022_s7, 4096 }
 0x3a3   : > { %p2398_p9 = scmp.ne.s32.totalorder %s2968_s23, %s2397_s13  ;;  %p2402_p8 = scmp.lt.u32.totalorder %s2968_s23, %s3022_s7 }
 0x3a4   : > { %p2403_p12 = scmp.lt.u32.totalorder %s2401_s14, %s2397_s13  ;;  %p2405_p0 = scmp.lt.u32.totalorder %s2397_s13, %s2968_s23 }
 0x3a5   : > { %p2399_p13 = pnand %p2398_p9, %p2661_p5 }
 0x3a6   : > { %p2404_p6 = por %p2403_p12, %p2402_p8 }
 0x3a7   : > { %p2400_p10 = pneg %p2399_p13 }
 0x3a8   : > { %p2406_p3 = por %p2405_p0, %p2404_p6 }
 0x3aa   : > { %p2407_p7 = pnand %p2406_p3, %p2400_p10 }
 0x3ac   : > { %2410 = shalt.err (!%p2407_p7)
}
 0x3ad   : > { %s2466_s16 = smov 64   ;;  %s2467_s29 = smov 4  }
 0x3ae   : > { %2146 = dma.vmem_to_hbm [thread:$0]  (%p2661_p5), %s2970_s21, 1024, %s2968_s23, %s1588_s28, %s2466_s16, %s2466_s16, %s2467_s29  }
 0x3af PF: > { %s3046_s11 = sld [smem:[#allocation15_spill]]  ;;  %p2173_p11 = scmp.ge.s32.totalorder %s2457_s27, 2 }
 0x3b0   : > { %s1617_s8 = sand.u32 1, %s2445_s24  }
 0x3b1   : > { %s1618_s30 = scalar_lea.sflag [#allocation4], %s1617_s8 }
 0x3b5   : > { %p3047_p1 = scmp.ne.s32.totalorder %s3046_s11, 0 }
 0x3b7   : > { %p2163_p2 = pnand %p2173_p11, %p3047_p1 }
 0x3b9   : > { %2440 = dma.done.wait (!%p2163_p2), %s1618_s30, 1024  }
 0x3ba   : > { %2442 = vsyncadd (!%p2163_p2), %s1618_s30, 4294966272  ;;  %p22_p4 = scmp.ge.s32.totalorder %s2647_s22, 6   ;;  %s3048_s24 = smov %s2449_s25 }
 0x3bb   : > { %s3049_s25 = smov %s2453_s26  ;;  %s3050_s26 = smov %s2657_s18 }
 0x3bc   : > { %s3051_s27 = smov %s2647_s22  ;;  %24 = sbr.rel (!%p22_p4) target bundleno = 7 (0x7), region = 107 }
 0x3c3   :  { %1623 = vsyncpa [#allocation3], 1 }
 0x3c4   :  { %1625 = vsyncpa [#allocation3 + $0x1], 1 }
 0x3c5   :  { %1626 = vsyncpa [#allocation6], 1 }
 0x3c6   :  { %1627 = vsyncpa [#allocation9], 1 }
 0x3c7   :  { %1628 = vsyncpa [#allocation4], 1 }
 0x3c8   :  { %1630 = vsyncpa [#allocation4 + $0x1], 1 }

// kernel: tpu_custom_call.1
= control target key start
LH: loop header
LB: loop body
LE: loop exit
PB: predicated region body
PF: predicated region fallthrough
CT: control target
= control target key end

     0   :  { %12 = vsyncpa [#allocation3], 0  ;;  %s3015_s0 = inlined_call_operand.hbm [shape: bf16[32,16,128], index: 0, kind: input, shape index: {}]   ;;  %s3016_s1 = inlined_call_operand.hbm [shape: bf16[128,128], index: 1, kind: input, shape index: {}]   ;;  %s3017_s2 = inlined_call_operand.hbm [shape: bf16[3,128,128], index: 2, kind: input, shape index: {}]   ;;  %s3018_s3 = inlined_call_operand.hbm [shape: bf16[128,128], index: 3, kind: input, shape index: {}]   ;;  %s3019_s4 = inlined_call_operand.vmem [shape: f32[1,128], index: 4, kind: input, shape index: {}]   ;;  %s3020_s5 = inlined_call_operand.vmem [shape: f32[1,128], index: 5, kind: input, shape index: {}]   ;;  %s3021_s6 = inlined_call_operand.vmem [shape: f32[1,128], index: 6, kind: input, shape index: {}]   ;;  %s3022_s7 = inlined_call_operand.hbm [shape: bf16[32,16,128], index: 7, kind: output, shape index: {}]  }
   0x1   :  { %14 = vsyncpa [#allocation3 + $0x1], 0 }
   0x2   :  { %15 = vsyncpa [#allocation6], 0 }
   0x3   :  { %16 = vsyncpa [#allocation9], 0 }
   0x4   :  { %17 = vsyncpa [#allocation4], 0 }
   0x5   :  { %19 = vsyncpa [#allocation4 + $0x1], 0  ;;  %s2508_s24 = smov 0   ;;  %s2510_s25 = smov 0  }
   0x6   :  { %s2512_s26 = smov 0   ;;  %s2514_s27 = smov 0  }
   0x7 LB: > { %s2529_s28 = sadd.s32 4294967295, %s2457_s27   ;;  %s1704_s29 = sadd.s32 4294967294, %s2457_s27   ;;  %s2457_s27 = sphi %s2514_s27, %s3051_s27   ;;  %s2453_s26 = sphi %s2512_s26, %s3050_s26   ;;  %s2449_s25 = sphi %s2510_s25, %s3049_s25   ;;  %s2445_s24 = sphi %s2508_s24, %s3048_s24  }
   0x8   : > { %p45_p0 = scmp.ne.s32.totalorder %s2449_s25, %s2445_s24  ;;  %p3023_p1 = scmp.eq.s32.totalorder %s2529_s28, 0 }
   0x9   : > { %p201_p3 = scmp.eq.s32.totalorder %s1704_s29, 3  ;;  %p1705_p5 = scmp.ge.s32.totalorder %s2457_s27, 1 }
   0xa   : > { %p2538_p4 = por %p3023_p1, %p45_p0  ;;  %p208_p7 = scmp.lt.s32.totalorder %s2457_s27, 5 }
   0xb   : > { %p2543_p6 = por %p201_p3, %p45_p0  ;;  %s2459_s10 = smov [#allocation5]  }
   0xc   : > { %s3027_s30 = scalar_select %p2538_p4, 1, 0 }
   0xd   : > { %s3028_s8 = scalar_select %p2543_p6, 1, 0 }
   0xe   : > { %p2548_p8 = pnand %p1705_p5, %p208_p7  ;;  %s220_s11 = sshll.u32 %s2459_s10, 4  ;;  %s2552_s11 = int_to_ptr.vmem [resolvable:$true] %s220_s11 }
   0xf   : > { %3029 = sst [smem:[#allocation15_spill]] %s3028_s8  ;;  %s2460_s13 = smov [#allocation7]  }
  0x10   : > { %s3030_s9 = scalar_select %p2548_p8, 1, 0 }
  0x11   : > { %p2148_p9 = pneg %p2548_p8  ;;  %s233_s14 = sshll.u32 %s2460_s13, 4  ;;  %s2562_s14 = int_to_ptr.vmem [resolvable:$true] %s233_s14 }
  0x12   : > { %s2461_s15 = smov [#allocation8]   ;;  %s2269_s19 = scalar_lea.hbm %s3016_s1, 1024 }
  0x13   : > { %p2558_p10 = pnand %p2148_p9, %p3023_p1  ;;  %s2564_s16 = sshll.u32 %s2461_s15, 4  ;;  %s247_s16 = int_to_ptr.vmem [resolvable:$true] %s2564_s16 }
  0x14   : > { %p2270_p11 = scmp.ne.s32.totalorder %s3016_s1, %s2269_s19  ;;  %p2276_p3 = scmp.lt.u32.totalorder %s2269_s19, %s3016_s1 }
  0x15   : > { %p2574_p12 = pneg %p2558_p10 }
  0x17   : > { %p2272_p13 = pnand %p2574_p12, %p2270_p11 }
  0x19   : > { %p2273_p0 = pneg %p2272_p13 }
  0x1b   : > { %p2278_p5 = pnand %p2276_p3, %p2273_p0 }
  0x1d   : > { %2281 = shalt.err (!%p2278_p5)
}
  0x1e   : > { %s2282_s10 = scalar_lea.vmem %s2552_s11, 1024  ;;  %p2290_p2 = scmp.lt.s32.totalorder %s2552_s11, %s2552_s11 }
  0x1f   : > { %p2283_p7 = scmp.ne.s32.totalorder %s2552_s11, %s2282_s10  ;;  %p2291_p6 = scmp.lt.s32.totalorder %s2282_s10, %s2282_s10 }
  0x21   : > { %p2285_p9 = pnand %p2283_p7, %p2574_p12  ;;  %p2292_p11 = por %p2291_p6, %p2290_p2 }
  0x23   : > { %p2286_p1 = pneg %p2285_p9 }
  0x25   : > { %p2293_p13 = pnand %p2292_p11, %p2286_p1 }
  0x27   : > { %2296 = shalt.err (!%p2293_p13)
}
  0x28   : > { %s2462_s13 = smov 64   ;;  %s2463_s15 = smov 4  }
  0x29   : > { %2151 = dma.hbm_to_vmem [thread:$0]  (!%p2558_p10), %s3016_s1, 1024, %s2552_s11, [#allocation6], %s2462_s13, %s2462_s13, %s2463_s15  }
  0x2a   : > { %s2297_s21 = scalar_lea.hbm %s3017_s2, 3072 }
  0x2b   : > { %p2298_p1 = scmp.ne.s32.totalorder %s3017_s2, %s2297_s21  ;;  %p2304_p0 = scmp.lt.u32.totalorder %s2297_s21, %s3017_s2 }
  0x2d   : > { %p2300_p2 = pnand %p2298_p1, %p2574_p12 }
  0x2f   : > { %p2301_p6 = pneg %p2300_p2 }
  0x31   : > { %p2306_p3 = pnand %p2304_p0, %p2301_p6 }
  0x33   : > { %2309 = shalt.err (!%p2306_p3)
}
  0x34   : > { %s2310_s11 = scalar_lea.vmem %s2562_s14, 3072  ;;  %p2318_p11 = scmp.lt.s32.totalorder %s2562_s14, %s2562_s14 }
  0x35   : > { %p2311_p5 = scmp.ne.s32.totalorder %s2562_s14, %s2310_s11  ;;  %p2319_p13 = scmp.lt.s32.totalorder %s2310_s11, %s2310_s11 }
  0x37   : > { %p2313_p7 = pnand %p2311_p5, %p2574_p12  ;;  %p2320_p1 = por %p2319_p13, %p2318_p11 }
  0x39   : > { %p2314_p9 = pneg %p2313_p7 }
  0x3b   : > { %p2321_p2 = pnand %p2320_p1, %p2314_p9 }
  0x3d   : > { %2324 = shalt.err (!%p2321_p2)
}
  0x3e   : > { %2154 = dma.hbm_to_vmem [thread:$0]  (!%p2558_p10), %s3017_s2, 3072, %s2562_s14, [#allocation6], %s2462_s13, %s2462_s13, %s2463_s15  }
  0x3f   : > { %s2325_s20 = scalar_lea.hbm %s3018_s3, 1024 }
  0x40   : > { %p2326_p6 = scmp.ne.s32.totalorder %s3018_s3, %s2325_s20  ;;  %p2332_p5 = scmp.lt.u32.totalorder %s2325_s20, %s3018_s3 }
  0x42   : > { %p2328_p0 = pnand %p2326_p6, %p2574_p12 }
  0x44   : > { %p2329_p3 = pneg %p2328_p0 }
  0x46   : > { %p2334_p7 = pnand %p2332_p5, %p2329_p3 }
  0x48   : > { %2337 = shalt.err (!%p2334_p7)
}
  0x49   : > { %s2338_s11 = scalar_lea.vmem %s247_s16, 1024  ;;  %p2346_p1 = scmp.lt.s32.totalorder %s247_s16, %s247_s16 }
  0x4a   : > { %p2339_p9 = scmp.ne.s32.totalorder %s247_s16, %s2338_s11  ;;  %p2347_p2 = scmp.lt.s32.totalorder %s2338_s11, %s2338_s11 }
  0x4c   : > { %p2341_p11 = pnand %p2339_p9, %p2574_p12  ;;  %p2348_p4 = por %p2347_p2, %p2346_p1 }
  0x4e   : > { %p2342_p13 = pneg %p2341_p11 }
  0x50   : > { %p2349_p8 = pnand %p2348_p4, %p2342_p13 }
  0x52   : > { %2352 = shalt.err (!%p2349_p8)
}
  0x53   : > { %2157 = dma.hbm_to_vmem [thread:$0]  (!%p2558_p10), %s3018_s3, 1024, %s247_s16, [#allocation9], %s2462_s13, %s2462_s13, %s2463_s15  }
  0x54   : > { %s2647_s22 = sadd.s32 1, %s2457_s27   ;;  %s32_s17 = sadd.s32 1, %s2453_s26 }
  0x55   : > { %s29_s12 = ssub.s32 %s2457_s27, %s2647_s22  ;;  %p39_p8 = scmp.ne.s32.totalorder %s2453_s26, %s2449_s25 }
  0x56   : > { %p30_p4 = scmp.eq.s32.totalorder %s29_s12, 0  ;;  %p40_p12 = scmp.eq.s32.totalorder %s2457_s27, 0 }
  0x57   : > { %p2169_p6 = scmp.lt.s32.totalorder %s2457_s27, 4  ;;  %p3033_p3 = scmp.eq.s32.totalorder %s2529_s28, 3 }
  0x58   : > { %s2657_s18 = scalar_select %p30_p4, %s2453_s26, %s32_s17  }
  0x59   : > { %p41_p0 = por %p40_p12, %p39_p8  ;;  %p2661_p5 = por %p3033_p3, %p39_p8 }
  0x5a   : > { %s269_s20 = sand.u32 1, %s2453_s26   ;;  %s1794_s21 = sshll.u32 %s2457_s27, 10 }
  0x5b   : > { %s1710_s16 = sshll.u32 %s269_s20, 6  ;;  %s2670_s10 = scalar_lea.hbm %s3015_s0, %s1794_s21 }
  0x5c   : > { %s273_s11 = scalar_lea.vmem [#allocation2], %s1710_s16  ;;  %p2672_p10 = pnand %p2169_p6, %p41_p0 }
  0x5d   : > { %s281_s14 = sshll.u32 %s273_s11, 4  ;;  %s2678_s12 = scalar_lea.sflag [#allocation3], %s269_s20  ;;  %s2676_s14 = int_to_ptr.vmem [resolvable:$true] %s281_s14 }
  0x5e   : > { %s2353_s17 = scalar_lea.hbm %s2670_s10, 1024  ;;  %p2355_p9 = pneg %p2672_p10 }
  0x5f   : > { %p2354_p7 = scmp.ne.s32.totalorder %s2670_s10, %s2353_s17  ;;  %s2358_s23 = scalar_lea.hbm %s3015_s0, 4096 }
  0x60   : > { %p2359_p1 = scmp.lt.u32.totalorder %s2670_s10, %s3015_s0  ;;  %p2360_p2 = scmp.lt.u32.totalorder %s2358_s23, %s2353_s17 }
  0x61   : > { %p2356_p11 = pnand %p2355_p9, %p2354_p7  ;;  %p2362_p8 = scmp.lt.u32.totalorder %s2353_s17, %s2670_s10 }
  0x62   : > { %p2361_p4 = por %p2360_p2, %p2359_p1 }
  0x63   : > { %p2357_p13 = pneg %p2356_p11 }
  0x64   : > { %p2363_p12 = por %p2362_p8, %p2361_p4 }
  0x66   : > { %p2364_p6 = pnand %p2363_p12, %p2357_p13 }
  0x68   : > { %2367 = shalt.err (!%p2364_p6)
}
  0x69   : > { %s2368_s20 = scalar_lea.vmem %s2676_s14, 1024  ;;  %s2464_s21 = smov [#allocation2]  }
  0x6a   : > { %p2369_p0 = scmp.ne.s32.totalorder %s2676_s14, %s2368_s20  ;;  %s2373_s16 = sshll.u32 %s2464_s21, 4  ;;  %s2374_s16 = int_to_ptr.vmem [resolvable:$false] %s2373_s16 }
  0x6b   : > { %s2375_s29 = scalar_lea.vmem %s2374_s16, 2048  ;;  %p2376_p11 = scmp.lt.s32.totalorder %s2676_s14, %s2374_s16 }
  0x6c   : > { %p2371_p3 = pnand %p2369_p0, %p2355_p9  ;;  %p2377_p1 = scmp.lt.s32.totalorder %s2375_s29, %s2368_s20 }
  0x6e   : > { %p2372_p7 = pneg %p2371_p3  ;;  %p2378_p2 = por %p2377_p1, %p2376_p11 }
  0x70   : > { %p2379_p4 = pnand %p2378_p2, %p2372_p7 }
  0x72   : > { %2382 = shalt.err (!%p2379_p4)
}
  0x73   : > { %2161 = dma.hbm_to_vmem [thread:$0]  (!%p2672_p10), %s2670_s10, 1024, %s2676_s14, %s2678_s12, %s2462_s13, %s2462_s13, %s2463_s15  }
  0x74   : > { %p3036_p9 = scmp.ne.s32.totalorder %s3030_s9, 0 }
  0x75   : > { %s2712_s17 = sand.u32 (!%p3036_p9), 1, %s2449_s25   ;;  %p3037_p13 = scmp.ne.s32.totalorder (!%p3036_p9), %s3027_s30, 0 }
  0x76   : > { %293 = sbr.rel (%p3036_p9) target bundleno = 943 (0x3af), region = 48  ;;  %s1715_s23 = sshll.u32 (!%p3036_p9), %s2712_s17, 6 }
  0x77   : > { %s296_s11 = scalar_lea.sflag (!%p3036_p9), [#allocation3], %s2712_s17  ;;  %s2718_s8 = scalar_lea.vmem (!%p3036_p9), [#allocation2], %s1715_s23 }
  0x7d   : > { %2428 = dma.done.wait (%p3037_p13), %s296_s11, 1024  }
  0x7e   : > { %2430 = vsyncadd (%p3037_p13), %s296_s11, 4294966272  ;;  %p3038_p10 = scmp.eq.s32.totalorder %s2529_s28, 0 }
  0x80   : > { %2432 = dma.done.wait (%p3038_p10), [#allocation6], 4096   ;;  %p3039_p8 = pmov %p3038_p10 }
  0x82   : > { %2434 = vsyncadd (%p3039_p8), [#allocation6], 4294963200  ;;  %p3040_p12 = pmov %p3039_p8 }
  0x83   : > { %p3041_p6 = pmov %p3039_p8 }
  0x84   : > { %2436 = dma.done.wait (%p3040_p12), [#allocation9], 1024  }
  0x85   : > { %2438 = vsyncadd (%p3041_p6), [#allocation9], 4294966272  ;;  %v2213_v0 = vld [vmem:[#allocation5] sm:$0xff]   ;;  %v2214_v1 = vld [vmem:[#allocation5 + $0x8] sm:$0xff]   ;;  %vm681_vm0 = vcmask 1040384   ;;  %vm716_vm3 = vcmask 1047552  }
  0x86   : > { %1940 = vmatprep.subr.bf16.mxu0 %v2213_v0  ;;  %v2215_v2 = vld [vmem:[#allocation5 + $0x10] sm:$0xff]   ;;  %v2216_v3 = vld [vmem:[#allocation5 + $0x18] sm:$0xff]   ;;  %v2733_v4 = vld [vmem:[%s2718_s8] sm:$0xff]   ;;  %vm682_vm1 = vsmask.f32 256  ;;  %s2937_s12 = scalar_lea.vmem [#allocation10], %s1715_s23 }
  0x87   : > { %1941 = vmatpush3.bf16.msra.mxu0 %v2213_v0  ;;  %v2217_v5 = vld [vmem:[#allocation5 + $0x20] sm:$0xff]   ;;  %1956 = vmatprep.mubr.bf16.mxu0 %v2733_v4  ;;  %v2230_v7 = vld [vmem:[#allocation7 + $0x8] sm:$0xff]   ;;  %v2231_v9 = vld [vmem:[#allocation7 + $0x10] sm:$0xff]   ;;  %vm717_vm4 = vsmask.f32 7424  ;;  %s1812_s20 = sshll.u32 %s2529_s28, 10 }
  0x88   : > { %1942 = vmatprep.subr.bf16.mxu0 %v2214_v1  ;;  %v2229_v6 = vld [vmem:[#allocation7] sm:$0xff]   ;;  %v2218_v8 = vld [vmem:[#allocation5 + $0x28] sm:$0xff]   ;;  %v2232_v10 = vld [vmem:[#allocation7 + $0x18] sm:$0xff]   ;;  %s1602_s21 = sshll.u32 %s2937_s12, 4  ;;  %s2968_s23 = scalar_lea.hbm %s3022_s7, %s1812_s20  ;;  %s2970_s21 = int_to_ptr.vmem [resolvable:$true] %s1602_s21 }
  0x89   : > { %1972 = vmatprep.subr.bf16.mxu1 %v2229_v6  ;;  %v2219_v11 = vld [vmem:[#allocation5 + $0x30] sm:$0xff]   ;;  %v2220_v12 = vld [vmem:[#allocation5 + $0x38] sm:$0xff]   ;;  %v2737_v13 = vld [vmem:[%s2718_s8 + $0x8] sm:$0xff]   ;;  %s1588_s28 = scalar_lea.sflag [#allocation4], %s2712_s17  ;;  %s2383_s11 = scalar_lea.vmem %s2970_s21, 1024 }
  0x8a   : > { %1973 = vmatpush3.bf16.msra.mxu1 %v2229_v6  ;;  %v2740_v14 = vld [vmem:[%s2718_s8 + $0x10] sm:$0xff]   ;;  %v2745_v15 = vld [vmem:[%s2718_s8 + $0x18] sm:$0xff]   ;;  %v2748_v16 = vld [vmem:[%s2718_s8 + $0x20] sm:$0xff]   ;;  %p2384_p0 = scmp.ne.s32.totalorder %s2970_s21, %s2383_s11 }
  0x8b   : > { %1943 = vmatpush3.bf16.msra.mxu0 %v2214_v1  ;;  %1974 = vmatprep.subr.bf16.mxu1 %v2230_v7  ;;  %v2753_v17 = vld [vmem:[%s2718_s8 + $0x28] sm:$0xff]   ;;  %v2756_v18 = vld [vmem:[%s2718_s8 + $0x30] sm:$0xff]   ;;  %v2761_v19 = vld [vmem:[%s2718_s8 + $0x38] sm:$0xff]   ;;  %s2465_s8 = smov [#allocation10]  }
  0x8c   : > { %1944 = vmatprep.subr.bf16.mxu0 %v2215_v2  ;;  %v2233_v20 = vld [vmem:[#allocation7 + $0x20] sm:$0xff]   ;;  %v2234_v21 = vld [vmem:[#allocation7 + $0x28] sm:$0xff]   ;;  %v2235_v22 = vld [vmem:[#allocation7 + $0x30] sm:$0xff]   ;;  %p2385_p3 = pnand %p2384_p0, %p2661_p5  ;;  %s2387_s30 = sshll.u32 %s2465_s8, 4  ;;  %s2388_s30 = int_to_ptr.vmem [resolvable:$false] %s2387_s30 }
  0x8d   : > { %v2236_v23 = vld [vmem:[#allocation7 + $0x38] sm:$0xff]   ;;  %v2764_v24 = vld [vmem:[#allocation7 + $0x40] sm:$0xff]   ;;  %v2254_v26 = vld [vmem:[#allocation8 + $0x8] sm:$0xff]   ;;  %s2389_s9 = scalar_lea.vmem %s2388_s30, 2048  ;;  %p2390_p11 = scmp.lt.s32.totalorder %s2970_s21, %s2388_s30 }
  0x8e   : > { %1975 = vmatpush3.bf16.msra.mxu1 %v2230_v7  ;;  %v2253_v25 = vld [vmem:[#allocation8] sm:$0xff]   ;;  %v2255_v27 = vld [vmem:[#allocation8 + $0x10] sm:$0xff]   ;;  %v2256_v28 = vld [vmem:[#allocation8 + $0x18] sm:$0xff]   ;;  %p2386_p7 = pneg %p2385_p3  ;;  %p2391_p1 = scmp.lt.s32.totalorder %s2389_s9, %s2383_s11 }
  0x8f   : > { %1945 = vmatpush3.bf16.msra.mxu0 %v2215_v2  ;;  %1976 = vmatprep.subr.bf16.mxu1 %v2231_v9  ;;  %v2257_v29 = vld [vmem:[#allocation8 + $0x20] sm:$0xff]   ;;  %v2258_v30 = vld [vmem:[#allocation8 + $0x28] sm:$0xff]   ;;  %vm2790_vm2 = vmand %vm681_vm0, %vm682_vm1 }
  0x90   : > { %1946 = vmatprep.subr.bf16.mxu0 %v2216_v3  ;;  %v2770_v31 = vld [vmem:[%s3019_s4] ss:$0 sm:$0xff]  ;;  %v2248_v63 = vld [vmem:[#allocation7 + $0x98] sm:$0xff]   ;;  %vm2876_vm5 = vmand %vm716_vm3, %vm717_vm4  ;;  %p2392_p2 = por %p2391_p1, %p2390_p11 }
  0x92   : > { %1977 = vmatpush3.bf16.msra.mxu1 %v2231_v9  ;;  %p2393_p4 = pnand %p2392_p2, %p2386_p7 }
  0x93   : > { %1947 = vmatpush3.bf16.msra.mxu0 %v2216_v3  ;;  %1978 = vmatprep.subr.bf16.mxu1 %v2232_v10 }
  0x94   : > { %1948 = vmatprep.subr.bf16.mxu0 %v2217_v5 }
  0x96   : > { %1979 = vmatpush3.bf16.msra.mxu1 %v2232_v10  ;;  %v2238_v10 = vld [vmem:[#allocation7 + $0x48] sm:$0xff]  }
  0x97   : > { %1949 = vmatpush3.bf16.msra.mxu0 %v2217_v5  ;;  %1980 = vmatprep.subr.bf16.mxu1 %v2233_v20 }
  0x98   : > { %1950 = vmatprep.subr.bf16.mxu0 %v2218_v8 }
  0x9a   : > { %1981 = vmatpush3.bf16.msra.mxu1 %v2233_v20 }
  0x9b   : > { %1951 = vmatpush3.bf16.msra.mxu0 %v2218_v8  ;;  %1982 = vmatprep.subr.bf16.mxu1 %v2234_v21 }
  0x9c   : > { %1952 = vmatprep.subr.bf16.mxu0 %v2219_v11 }
  0x9e   : > { %1983 = vmatpush3.bf16.msra.mxu1 %v2234_v21 }
  0x9f   : > { %1953 = vmatpush3.bf16.msra.mxu0 %v2219_v11  ;;  %1984 = vmatprep.subr.bf16.mxu1 %v2235_v22 }
  0xa0   : > { %1954 = vmatprep.subr.bf16.mxu0 %v2220_v12 }
  0xa2   : > { %1985 = vmatpush3.bf16.msra.mxu1 %v2235_v22 }
  0xa3   : > { %1955 = vmatpush3.bf16.msra.mxu0 %v2220_v12  ;;  %1986 = vmatprep.subr.bf16.mxu1 %v2236_v23 }
  0xa4   : > { %2068 = vmatprep.subr.bf16.mxu0 %v2253_v25 }
  0xa6   : > { %1957 = vmatmul.mubr.bf16.vlgmr.msra.gmra.mrb[0].mxu0 %v2737_v13  ;;  %1987 = vmatpush3.bf16.msra.mxu1 %v2236_v23 }
  0xa7   : > { %1960 = vmatprep.mubr.bf16.mxu0 %v2740_v14  ;;  %2004 = vmatprep.subr.bf16.mxu1 %v2764_v24 }
  0xa8   : > { %2069 = vmatpush3.bf16.msra.mxu0 %v2253_v25 }
  0xa9   : > { %2070 = vmatprep.subr.bf16.mxu0 %v2254_v26 }
  0xac   : > { %2071 = vmatpush3.bf16.msra.mxu0 %v2254_v26 }
  0xad   : > { %2072 = vmatprep.subr.bf16.mxu0 %v2255_v27 }
  0xae   : > { %1961 = vmatmul.mubr.bf16.gmra.mrb[4].mxu0 %v2745_v15 }
  0xaf   : > { %1964 = vmatprep.mubr.bf16.mxu0 %v2748_v16 }
  0xb0   : > { %2073 = vmatpush3.bf16.msra.mxu0 %v2255_v27 }
  0xb1   : > { %2074 = vmatprep.subr.bf16.mxu0 %v2256_v28 }
  0xb4   : > { %2075 = vmatpush3.bf16.msra.mxu0 %v2256_v28 }
  0xb5   : > { %2076 = vmatprep.subr.bf16.mxu0 %v2257_v29 }
  0xb6   : > { %1965 = vmatmul.mubr.bf16.gmra.mrb[8].mxu0 %v2753_v17 }
  0xb7   : > { %1968 = vmatprep.mubr.bf16.mxu0 %v2756_v18 }
  0xb8   : > { %2077 = vmatpush3.bf16.msra.mxu0 %v2257_v29 }
  0xb9   : > { %2078 = vmatprep.subr.bf16.mxu0 %v2258_v30 }
  0xbc   : > { %2079 = vmatpush3.bf16.msra.mxu0 %v2258_v30 }
  0xbe   : > { %1969 = vmatmul.mubr.bf16.gmra.mrb[12].mxu0 %v2761_v19 }
 0x179   : > { %v1958_v32 = vpop.f32.mrb[0].mxu0 }
 0x17a   : > { %v579_v33 = vadd.f32 %v1958_v32, %v2770_v31  ;;  %v507_v34 = vpop.f32.mrb[1].mxu0 }
 0x17b   : > { %v577_v35 = vadd.f32 %v2770_v31, %v507_v34  ;;  %v1959_v36 = vpop.f32.mrb[2].mxu0 }
 0x17c   : > { %v580_v37 = vadd.f32 %v1959_v36, %v2770_v31  ;;  %v510_v38 = vpop.f32.mrb[3].mxu0  ;;  %v595_v40 = vmax.f32 %v579_v33, 0.0 }
 0x17d   : > { %v578_v39 = vadd.f32 %v2770_v31, %v510_v38  ;;  %v593_v42 = vmax.f32 %v577_v35, 0.0  ;;  %v2239_v35 = vld [vmem:[#allocation7 + $0x50] sm:$0xff]  }
 0x17e   : > { %v596_v41 = vmax.f32 %v580_v37, 0.0 }
 0x17f   : > { %v594_v43 = vmax.f32 %v578_v39, 0.0 }
 0x180   : > { %v2776_v44 = vpack.c.bf16 %v596_v41, %v595_v40 }
 0x181   : > { %v2778_v45 = vpack.c.bf16 %v594_v43, %v593_v42  ;;  %v1962_v46 = vpop.f32.mrb[4].mxu0 }
 0x182   : > { %v625_v47 = vshrl.u32 %v2776_v44, 16  ;;  %v583_v48 = vadd.f32 %v1962_v46, %v2770_v31  ;;  %v523_v49 = vpop.f32.mrb[5].mxu0  ;;  %v628_v50 = vshll.u32 %v2776_v44, 16 }
 0x183   : > { %v581_v51 = vadd.f32 %v2770_v31, %v523_v49  ;;  %v1963_v52 = vpop.f32.mrb[6].mxu0  ;;  %v618_v53 = vshrl.u32 %v2778_v45, 16  ;;  %v621_v60 = vshll.u32 %v2778_v45, 16 }
 0x184   : > { %v584_v54 = vadd.f32 %v1963_v52, %v2770_v31  ;;  %v526_v55 = vpop.f32.mrb[7].mxu0  ;;  %v627_v56 = vrot.slane %v625_v47, 7  ;;  %v694_v57 = vrot.slane %v628_v50, 1  ;;  %v599_v61 = vmax.f32 %v583_v48, 0.0  ;;  %v2240_v48 = vld [vmem:[#allocation7 + $0x58] sm:$0xff]  }
 0x185   : > { %v582_v58 = vadd.f32 %v2770_v31, %v526_v55  ;;  %v620_v59 = vrot.slane %v618_v53, 7  ;;  %v597_v2 = vmax.f32 %v581_v51, 0.0 }
 0x186   : > { %v600_v62 = vmax.f32 %v584_v54, 0.0  ;;  %v630_v0 = vor.u32 %v628_v50, %v627_v56  ;;  %v2794_v1 = vor.u32 %v694_v57, %v625_v47 }
 0x187   : > { %v598_v3 = vmax.f32 %v582_v58, 0.0  ;;  %v623_v5 = vor.u32 %v621_v60, %v620_v59 }
 0x188   : > { %v2798_v6 = vpack.c.bf16 %v600_v62, %v599_v61  ;;  %v685_v21 = vsel %vm2790_vm2, 0, %v630_v0 }
 0x189   : > { %v2800_v7 = vpack.c.bf16 %v598_v3, %v597_v2  ;;  %v1966_v8 = vpop.f32.mrb[8].mxu0  ;;  %v684_v9 = vsel %vm2790_vm2, 0, %v623_v5  ;;  %v2241_v5 = vld [vmem:[#allocation7 + $0x60] sm:$0xff]  }
 0x18a   : > { %v639_v11 = vshrl.u32 %v2798_v6, 16  ;;  %v587_v12 = vadd.f32 %v1966_v8, %v2770_v31  ;;  %v539_v20 = vpop.f32.mrb[9].mxu0  ;;  %1988 = vmatprep.mubr.bf16.mxu1 %v684_v9  ;;  %v642_v22 = vshll.u32 %v2798_v6, 16 }
 0x18b   : > { %v632_v23 = vshrl.u32 %v2800_v7, 16  ;;  %v585_v25 = vadd.f32 %v2770_v31, %v539_v20  ;;  %v1967_v26 = vpop.f32.mrb[10].mxu0  ;;  %1989 = vmatmul.mubr.bf16.vlgmr.msra.gmra.mrb[0].mxu1 %v685_v21  ;;  %v635_v34 = vshll.u32 %v2800_v7, 16 }
 0x18c   : > { %v588_v27 = vadd.f32 %v1967_v26, %v2770_v31  ;;  %2005 = vmatpush3.bf16.msra.mxu1 %v2764_v24  ;;  %v542_v28 = vpop.f32.mrb[11].mxu0  ;;  %v641_v29 = vrot.slane %v639_v11, 7  ;;  %v698_v30 = vrot.slane %v642_v22, 1  ;;  %v603_v36 = vmax.f32 %v587_v12, 0.0  ;;  %v2242_v26 = vld [vmem:[#allocation7 + $0x68] sm:$0xff]  }
 0x18d   : > { %v586_v32 = vadd.f32 %v2770_v31, %v542_v28  ;;  %2006 = vmatprep.subr.bf16.mxu1 %v2238_v10  ;;  %v634_v33 = vrot.slane %v632_v23, 7  ;;  %v601_v40 = vmax.f32 %v585_v25, 0.0 }
 0x18e   : > { %v604_v37 = vmax.f32 %v588_v27, 0.0  ;;  %v644_v38 = vor.u32 %v642_v22, %v641_v29  ;;  %v2817_v39 = vor.u32 %v698_v30, %v639_v11 }
 0x18f   : > { %v602_v41 = vmax.f32 %v586_v32, 0.0  ;;  %v637_v24 = vor.u32 %v635_v34, %v634_v33 }
 0x190   : > { %v2821_v42 = vpack.c.bf16 %v604_v37, %v603_v36  ;;  %2007 = vmatpush3.bf16.msra.mxu1 %v2238_v10  ;;  %v687_v52 = vsel %vm2790_vm2, 0, %v644_v38  ;;  %v2243_v37 = vld [vmem:[#allocation7 + $0x70] sm:$0xff]  }
 0x191   : > { %v2823_v43 = vpack.c.bf16 %v602_v41, %v601_v40  ;;  %v1970_v46 = vpop.f32.mrb[12].mxu0  ;;  %v686_v47 = vsel %vm2790_vm2, 0, %v637_v24  ;;  %2008 = vmatprep.subr.bf16.mxu1 %v2239_v35 }
 0x192   : > { %v653_v49 = vshrl.u32 %v2821_v42, 16  ;;  %v591_v50 = vadd.f32 %v1970_v46, %v2770_v31  ;;  %v555_v51 = vpop.f32.mrb[13].mxu0  ;;  %1992 = vmatprep.mubr.bf16.mxu1 %v686_v47  ;;  %v656_v54 = vshll.u32 %v2821_v42, 16  ;;  %v2244_v46 = vld [vmem:[#allocation7 + $0x78] sm:$0xff]  }
 0x193   : > { %v646_v55 = vshrl.u32 %v2823_v43, 16  ;;  %v589_v56 = vadd.f32 %v2770_v31, %v555_v51  ;;  %v1971_v57 = vpop.f32.mrb[14].mxu0  ;;  %1993 = vmatmul.mubr.bf16.gmra.mrb[4].mxu1 %v687_v52  ;;  %v649_v3 = vshll.u32 %v2823_v43, 16  ;;  %v2249_v51 = vld [vmem:[#allocation7 + $0xa0] sm:$0xff]   ;;  %v2250_v52 = vld [vmem:[#allocation7 + $0xa8] sm:$0xff]  }
 0x194   : > { %v592_v58 = vadd.f32 %v1971_v57, %v2770_v31  ;;  %2009 = vmatpush3.bf16.msra.mxu1 %v2239_v35  ;;  %v558_v59 = vpop.f32.mrb[15].mxu0  ;;  %v655_v61 = vrot.slane %v653_v49, 7  ;;  %v702_v62 = vrot.slane %v656_v54, 1  ;;  %v607_v8 = vmax.f32 %v591_v50, 0.0  ;;  %v2247_v50 = vld [vmem:[#allocation7 + $0x90] sm:$0xff]  }
 0x195   : > { %v590_v0 = vadd.f32 %v2770_v31, %v558_v59  ;;  %2010 = vmatprep.subr.bf16.mxu1 %v2240_v48  ;;  %v648_v2 = vrot.slane %v646_v55, 7  ;;  %v605_v12 = vmax.f32 %v589_v56, 0.0  ;;  %v696_v57 = vrot.slane %v635_v34, 1 }
 0x196   : > { %v608_v9 = vmax.f32 %v592_v58, 0.0  ;;  %v658_v10 = vor.u32 %v656_v54, %v655_v61  ;;  %v2839_v11 = vor.u32 %v702_v62, %v653_v49  ;;  %v2246_v49 = vld [vmem:[#allocation7 + $0x88] sm:$0xff]   ;;  %v2251_v54 = vld [vmem:[#allocation7 + $0xb0] sm:$0xff]   ;;  %v700_v59 = vrot.slane %v649_v3, 1 }
 0x197   : > { %v606_v20 = vmax.f32 %v590_v0, 0.0  ;;  %v651_v21 = vor.u32 %v649_v3, %v648_v2  ;;  %v2259_v62 = vld [vmem:[#allocation8 + $0x30] sm:$0xff]   ;;  %v2260_v0 = vld [vmem:[#allocation8 + $0x38] sm:$0xff]   ;;  %v1761_v2 = vld [vmem:[%s3020_s5] ss:$0 sm:$0xff] }
 0x198   : > { %v2843_v22 = vpack.c.bf16 %v608_v9, %v607_v8  ;;  %2011 = vmatpush3.bf16.msra.mxu1 %v2240_v48  ;;  %v689_v28 = vsel %vm2790_vm2, 0, %v658_v10  ;;  %v2245_v48 = vld [vmem:[#allocation7 + $0x80] sm:$0xff]   ;;  %v701_v34 = vor.u32 %v700_v59, %v646_v55  ;;  %2080 = vmatprep.subr.bf16.mxu0 %v2259_v62 }
 0x199   : > { %v2845_v31 = vpack.c.bf16 %v606_v20, %v605_v12  ;;  %v688_v25 = vsel %vm2790_vm2, 0, %v651_v21  ;;  %2012 = vmatprep.subr.bf16.mxu1 %v2241_v5  ;;  %2081 = vmatpush3.bf16.msra.mxu0 %v2259_v62 }
 0x19a   : > { %v667_v27 = vshrl.u32 %v2843_v22, 16  ;;  %1996 = vmatprep.mubr.bf16.mxu1 %v688_v25  ;;  %v670_v29 = vshll.u32 %v2843_v22, 16  ;;  %2082 = vmatprep.subr.bf16.mxu0 %v2260_v0 }
 0x19b   : > { %v660_v30 = vshrl.u32 %v2845_v31, 16  ;;  %1997 = vmatmul.mubr.bf16.gmra.mrb[8].mxu1 %v689_v28  ;;  %v663_v36 = vshll.u32 %v2845_v31, 16 }
 0x19c   : > { %2013 = vmatpush3.bf16.msra.mxu1 %v2241_v5  ;;  %v669_v32 = vrot.slane %v667_v27, 7  ;;  %v706_v33 = vrot.slane %v670_v29, 1 }
 0x19d   : > { %2014 = vmatprep.subr.bf16.mxu1 %v2242_v26  ;;  %v662_v35 = vrot.slane %v660_v30, 7  ;;  %2083 = vmatpush3.bf16.msra.mxu0 %v2260_v0 }
 0x19e   : > { %v672_v38 = vor.u32 %v670_v29, %v669_v32  ;;  %v2857_v40 = vor.u32 %v706_v33, %v667_v27 }
 0x19f   : > { %v665_v41 = vor.u32 %v663_v36, %v662_v35 }
 0x1a0   : > { %2015 = vmatpush3.bf16.msra.mxu1 %v2242_v26  ;;  %v691_v47 = vsel %vm2790_vm2, 0, %v672_v38 }
 0x1a1   : > { %v690_v24 = vsel %vm2790_vm2, 0, %v665_v41  ;;  %2016 = vmatprep.subr.bf16.mxu1 %v2243_v37 }
 0x1a2   : > { %2000 = vmatprep.mubr.bf16.mxu1 %v690_v24 }
 0x1a3   : > { %2001 = vmatmul.mubr.bf16.gmra.mrb[12].mxu1 %v691_v47 }
 0x1a4   : > { %2017 = vmatpush3.bf16.msra.mxu1 %v2243_v37  ;;  %2020 = vmatprep.mubr.bf16.mxu1 %v2778_v45  ;;  %v697_v45 = vor.u32 %v696_v57, %v632_v23  ;;  %v723_v23 = vsel %vm2876_vm5, %v701_v34, 0 }
 0x1a5   : > { %2018 = vmatprep.subr.bf16.mxu1 %v2244_v46 }
 0x1a6   : > { %v721_v58 = vsel %vm2876_vm5, %v697_v45, 0 }
 0x1a8   : > { %2019 = vmatpush3.bf16.msra.mxu1 %v2244_v46 }
 0x1a9   : > { %2036 = vmatprep.subr.bf16.mxu1 %v2245_v48 }
 0x1ab   : > { %2021 = vmatmul.mubr.bf16.vlgmr.msra.gmra.mrb[0].mxu1 %v2776_v44  ;;  %v692_v44 = vrot.slane %v621_v60, 1 }
 0x1ac   : > { %2037 = vmatpush3.bf16.msra.mxu1 %v2245_v48  ;;  %2024 = vmatprep.mubr.bf16.mxu1 %v2800_v7  ;;  %v722_v7 = vsel %vm2876_vm5, %v2817_v39, 0  ;;  %v726_v39 = vsel %vm2876_vm5, %v2857_v40, 0 }
 0x1ad   : > { %2038 = vmatprep.subr.bf16.mxu1 %v2246_v49 }
 0x1b0   : > { %2039 = vmatpush3.bf16.msra.mxu1 %v2246_v49 }
 0x1b1   : > { %2040 = vmatprep.subr.bf16.mxu1 %v2247_v50 }
 0x1b3   : > { %2025 = vmatmul.mubr.bf16.gmra.mrb[4].mxu1 %v2798_v6  ;;  %v693_v6 = vor.u32 %v692_v44, %v618_v53  ;;  %v720_v53 = vsel %vm2876_vm5, %v2794_v1, 0  ;;  %v704_v1 = vrot.slane %v663_v36, 1 }
 0x1b4   : > { %2041 = vmatpush3.bf16.msra.mxu1 %v2247_v50  ;;  %2028 = vmatprep.mubr.bf16.mxu1 %v2823_v43  ;;  %v724_v43 = vsel %vm2876_vm5, %v2839_v11, 0 }
 0x1b5   : > { %2042 = vmatprep.subr.bf16.mxu1 %v2248_v63  ;;  %v719_v60 = vsel %vm2876_vm5, %v693_v6, 0  ;;  %v705_v61 = vor.u32 %v704_v1, %v660_v30 }
 0x1b7   : > { %v725_v55 = vsel %vm2876_vm5, %v705_v61, 0 }
 0x1b8   : > { %2043 = vmatpush3.bf16.msra.mxu1 %v2248_v63 }
 0x1b9   : > { %2044 = vmatprep.subr.bf16.mxu1 %v2249_v51 }
 0x1bb   : > { %2029 = vmatmul.mubr.bf16.gmra.mrb[8].mxu1 %v2821_v42  ;;  %v2252_v42 = vld [vmem:[#allocation7 + $0xb8] sm:$0xff]  }
 0x1bc   : > { %2045 = vmatpush3.bf16.msra.mxu1 %v2249_v51  ;;  %2032 = vmatprep.mubr.bf16.mxu1 %v2845_v31 }
 0x1bd   : > { %2046 = vmatprep.subr.bf16.mxu1 %v2250_v52 }
 0x1c0   : > { %2047 = vmatpush3.bf16.msra.mxu1 %v2250_v52 }
 0x1c1   : > { %2048 = vmatprep.subr.bf16.mxu1 %v2251_v54 }
 0x1c3   : > { %2033 = vmatmul.mubr.bf16.gmra.mrb[12].mxu1 %v2843_v22 }
 0x1c4   : > { %2049 = vmatpush3.bf16.msra.mxu1 %v2251_v54  ;;  %2052 = vmatprep.mubr.bf16.mxu1 %v719_v60 }
 0x1c5   : > { %2050 = vmatprep.subr.bf16.mxu1 %v2252_v42 }
 0x1c8   : > { %2051 = vmatpush3.bf16.msra.mxu1 %v2252_v42 }
 0x1cb   : > { %2053 = vmatmul.mubr.bf16.vlgmr.msra.gmra.mrb[0].mxu1 %v720_v53 }
 0x1cc   : > { %2056 = vmatprep.mubr.bf16.mxu1 %v721_v58 }
 0x1d3   : > { %2057 = vmatmul.mubr.bf16.gmra.mrb[4].mxu1 %v722_v7 }
 0x1d4   : > { %2060 = vmatprep.mubr.bf16.mxu1 %v723_v23 }
 0x1db   : > { %2061 = vmatmul.mubr.bf16.gmra.mrb[8].mxu1 %v724_v43 }
 0x1dc   : > { %2064 = vmatprep.mubr.bf16.mxu1 %v725_v55 }
 0x1e3   : > { %2065 = vmatmul.mubr.bf16.gmra.mrb[12].mxu1 %v726_v39 }
 0x29e   : > { %v2054_v3 = vpop.f32.mrb[0].mxu1 }
 0x29f   : > { %v1237_v5 = vadd.f32 %v2054_v3, %v1761_v2  ;;  %v1149_v8 = vpop.f32.mrb[1].mxu1 }
 0x2a0   : > { %v1235_v9 = vadd.f32 %v1761_v2, %v1149_v8  ;;  %v2055_v10 = vpop.f32.mrb[2].mxu1  ;;  %v1461_v8 = vunpack.c.l.bf16 %v2737_v13 }
 0x2a1   : > { %v1238_v11 = vadd.f32 %v2055_v10, %v1761_v2  ;;  %v1152_v12 = vpop.f32.mrb[3].mxu1  ;;  %v1253_v21 = vmax.f32 %v1237_v5, 0.0  ;;  %v2919_v5 = vld [vmem:[%s3021_s6] ss:$0 sm:$0xff] }
 0x2a2   : > { %v1236_v20 = vadd.f32 %v1761_v2, %v1152_v12  ;;  %v1251_v31 = vmax.f32 %v1235_v9, 0.0  ;;  %v1459_v9 = vunpack.c.l.bf16 %v2733_v4  ;;  %v1462_v12 = vunpack.c.h.bf16 %v2737_v13 }
 0x2a3   : > { %v1254_v22 = vmax.f32 %v1238_v11, 0.0 }
 0x2a4   : > { %v1252_v25 = vmax.f32 %v1236_v20, 0.0  ;;  %v1460_v20 = vunpack.c.h.bf16 %v2733_v4 }
 0x2a5   : > { %v1268_v26 = vpack.c.bf16 %v1254_v22, %v1253_v21 }
 0x2a6   : > { %v1267_v27 = vpack.c.bf16 %v1252_v25, %v1251_v31  ;;  %v2058_v28 = vpop.f32.mrb[4].mxu1 }
 0x2a7   : > { %v1241_v29 = vadd.f32 %v2058_v28, %v1761_v2  ;;  %v1165_v30 = vpop.f32.mrb[5].mxu1 }
 0x2a8   : > { %v1239_v32 = vadd.f32 %v1761_v2, %v1165_v30  ;;  %v2059_v33 = vpop.f32.mrb[6].mxu1  ;;  %2084 = vmatprep.mubr.bf16.mxu0 %v1267_v27 }
 0x2a9   : > { %v1242_v35 = vadd.f32 %v2059_v33, %v1761_v2  ;;  %v1168_v36 = vpop.f32.mrb[7].mxu1  ;;  %2085 = vmatmul.mubr.bf16.vlgmr.msra.gmra.mrb[16].mxu0 %v1268_v26  ;;  %v1257_v38 = vmax.f32 %v1241_v29, 0.0 }
 0x2aa   : > { %v1240_v37 = vadd.f32 %v1761_v2, %v1168_v36  ;;  %v1255_v41 = vmax.f32 %v1239_v32, 0.0 }
 0x2ab   : > { %v1258_v40 = vmax.f32 %v1242_v35, 0.0  ;;  %v1465_v35 = vunpack.c.l.bf16 %v2745_v15 }
 0x2ac   : > { %v1256_v24 = vmax.f32 %v1240_v37, 0.0  ;;  %v1463_v37 = vunpack.c.l.bf16 %v2740_v14 }
 0x2ad   : > { %v1270_v46 = vpack.c.bf16 %v1258_v40, %v1257_v38 }
 0x2ae   : > { %v1269_v47 = vpack.c.bf16 %v1256_v24, %v1255_v41  ;;  %v2062_v48 = vpop.f32.mrb[8].mxu1  ;;  %v1466_v24 = vunpack.c.h.bf16 %v2745_v15 }
 0x2af   : > { %v1245_v49 = vadd.f32 %v2062_v48, %v1761_v2  ;;  %v1181_v50 = vpop.f32.mrb[9].mxu1 }
 0x2b0   : > { %v1243_v63 = vadd.f32 %v1761_v2, %v1181_v50  ;;  %v2063_v51 = vpop.f32.mrb[10].mxu1  ;;  %2088 = vmatprep.mubr.bf16.mxu0 %v1269_v47 }
 0x2b1   : > { %v1246_v52 = vadd.f32 %v2063_v51, %v1761_v2  ;;  %v1184_v44 = vpop.f32.mrb[11].mxu1  ;;  %2089 = vmatmul.mubr.bf16.gmra.mrb[20].mxu0 %v1270_v46  ;;  %v1261_v6 = vmax.f32 %v1245_v49, 0.0  ;;  %v1464_v49 = vunpack.c.h.bf16 %v2740_v14  ;;  %v1469_v14 = vunpack.c.l.bf16 %v2753_v17 }
 0x2b2   : > { %v1244_v54 = vadd.f32 %v1761_v2, %v1184_v44  ;;  %v1259_v42 = vmax.f32 %v1243_v63, 0.0 }
 0x2b3   : > { %v1262_v56 = vmax.f32 %v1246_v52, 0.0 }
 0x2b4   : > { %v1260_v60 = vmax.f32 %v1244_v54, 0.0 }
 0x2b5   : > { %v1272_v57 = vpack.c.bf16 %v1262_v56, %v1261_v6 }
 0x2b6   : > { %v1271_v45 = vpack.c.bf16 %v1260_v60, %v1259_v42  ;;  %v2066_v53 = vpop.f32.mrb[12].mxu1 }
 0x2b7   : > { %v1249_v58 = vadd.f32 %v2066_v53, %v1761_v2  ;;  %v1197_v59 = vpop.f32.mrb[13].mxu1 }
 0x2b8   : > { %v1247_v34 = vadd.f32 %v1761_v2, %v1197_v59  ;;  %v2067_v7 = vpop.f32.mrb[14].mxu1  ;;  %2092 = vmatprep.mubr.bf16.mxu0 %v1271_v45  ;;  %v1467_v45 = vunpack.c.l.bf16 %v2748_v16 }
 0x2b9   : > { %v1250_v23 = vadd.f32 %v2067_v7, %v1761_v2  ;;  %v1200_v1 = vpop.f32.mrb[15].mxu1  ;;  %2093 = vmatmul.mubr.bf16.gmra.mrb[24].mxu0 %v1272_v57  ;;  %v1265_v43 = vmax.f32 %v1249_v58, 0.0 }
 0x2ba   : > { %v1248_v61 = vadd.f32 %v1761_v2, %v1200_v1  ;;  %v1263_v39 = vmax.f32 %v1247_v34, 0.0  ;;  %v1470_v34 = vunpack.c.h.bf16 %v2753_v17 }
 0x2bb   : > { %v1266_v55 = vmax.f32 %v1250_v23, 0.0 }
 0x2bc   : > { %v1264_v62 = vmax.f32 %v1248_v61, 0.0  ;;  %v1468_v61 = vunpack.c.h.bf16 %v2748_v16 }
 0x2bd   : > { %v1274_v0 = vpack.c.bf16 %v1266_v55, %v1265_v43 }
 0x2be   : > { %v1273_v3 = vpack.c.bf16 %v1264_v62, %v1263_v39 }
 0x2c0   : > { %2096 = vmatprep.mubr.bf16.mxu0 %v1273_v3 }
 0x2c1   : > { %2097 = vmatmul.mubr.bf16.gmra.mrb[28].mxu0 %v1274_v0 }
 0x37c   : > { %v2086_v10 = vpop.f32.mrb[16].mxu0 }
 0x37d   : > { %v1445_v2 = vadd.f32 %v2086_v10, %v2919_v5  ;;  %v1373_v11 = vpop.f32.mrb[17].mxu0  ;;  %v1473_v10 = vunpack.c.l.bf16 %v2761_v19 }
 0x37e   : > { %v1443_v21 = vadd.f32 %v2919_v5, %v1373_v11  ;;  %v2087_v22 = vpop.f32.mrb[18].mxu0 }
 0x37f   : > { %v1477_v31 = vadd.f32 %v1461_v8, %v1445_v2  ;;  %v1446_v25 = vadd.f32 %v2087_v22, %v2919_v5  ;;  %v1376_v26 = vpop.f32.mrb[19].mxu0 }
 0x380   : > { %v1475_v27 = vadd.f32 %v1459_v9, %v1443_v21  ;;  %v1444_v28 = vadd.f32 %v2919_v5, %v1376_v26 }
 0x381   : > { %v1478_v29 = vadd.f32 %v1462_v12, %v1446_v25  ;;  %v1493_v32 = vmax.f32 %v1477_v31, 0.0  ;;  %v1471_v12 = vunpack.c.l.bf16 %v2756_v18  ;;  %v1474_v31 = vunpack.c.h.bf16 %v2761_v19 }
 0x382   : > { %v1476_v30 = vadd.f32 %v1460_v20, %v1444_v28  ;;  %v1491_v13 = vmax.f32 %v1475_v27, 0.0  ;;  %v1472_v28 = vunpack.c.h.bf16 %v2756_v18 }
 0x383   : > { %v1494_v33 = vmax.f32 %v1478_v29, 0.0 }
 0x384   : > { %v1492_v36 = vmax.f32 %v1476_v30, 0.0  ;;  %v2090_v4 = vpop.f32.mrb[20].mxu0 }
 0x385   : > { %v1821_v38 = vpack.c.bf16 %v1494_v33, %v1493_v32  ;;  %v1449_v40 = vadd.f32 %v2090_v4, %v2919_v5  ;;  %v1389_v41 = vpop.f32.mrb[21].mxu0 }
 0x386   : > { %v1816_v46 = vpack.c.bf16 %v1492_v36, %v1491_v13  ;;  %v1447_v47 = vadd.f32 %v2919_v5, %v1389_v41  ;;  %v2091_v48 = vpop.f32.mrb[22].mxu0 }
 0x387   : > { %1853 = vst [vmem:[%s2937_s12 + $0x8] sm:$0xff] %v1821_v38   ;;  %v1481_v50 = vadd.f32 %v1465_v35, %v1449_v40  ;;  %v1450_v63 = vadd.f32 %v2091_v48, %v2919_v5  ;;  %v1392_v51 = vpop.f32.mrb[23].mxu0 }
 0x388   : > { %1817 = vst [vmem:[%s2937_s12] sm:$0xff] %v1816_v46   ;;  %v1479_v52 = vadd.f32 %v1463_v37, %v1447_v47  ;;  %v1448_v15 = vadd.f32 %v2919_v5, %v1392_v51 }
 0x389   : > { %v1482_v44 = vadd.f32 %v1466_v24, %v1450_v63  ;;  %v1497_v6 = vmax.f32 %v1481_v50, 0.0 }
 0x38a   : > { %v1480_v54 = vadd.f32 %v1464_v49, %v1448_v15  ;;  %v1495_v42 = vmax.f32 %v1479_v52, 0.0 }
 0x38b   : > { %v1498_v56 = vmax.f32 %v1482_v44, 0.0 }
 0x38c   : > { %v1496_v60 = vmax.f32 %v1480_v54, 0.0  ;;  %v2094_v57 = vpop.f32.mrb[24].mxu0 }
 0x38d   : > { %v1831_v53 = vpack.c.bf16 %v1498_v56, %v1497_v6  ;;  %v1453_v58 = vadd.f32 %v2094_v57, %v2919_v5  ;;  %v1405_v59 = vpop.f32.mrb[25].mxu0 }
 0x38e   : > { %v1826_v7 = vpack.c.bf16 %v1496_v60, %v1495_v42  ;;  %v1451_v23 = vadd.f32 %v2919_v5, %v1405_v59  ;;  %v2095_v1 = vpop.f32.mrb[26].mxu0 }
 0x38f   : > { %1855 = vst [vmem:[%s2937_s12 + $0x18] sm:$0xff] %v1831_v53   ;;  %v1485_v43 = vadd.f32 %v1469_v14, %v1453_v58  ;;  %v1454_v55 = vadd.f32 %v2095_v1, %v2919_v5  ;;  %v1408_v39 = vpop.f32.mrb[27].mxu0 }
 0x390   : > { %1854 = vst [vmem:[%s2937_s12 + $0x10] sm:$0xff] %v1826_v7   ;;  %v1483_v62 = vadd.f32 %v1467_v45, %v1451_v23  ;;  %v1452_v0 = vadd.f32 %v2919_v5, %v1408_v39 }
 0x391   : > { %v1486_v3 = vadd.f32 %v1470_v34, %v1454_v55  ;;  %v1501_v9 = vmax.f32 %v1485_v43, 0.0 }
 0x392   : > { %v1484_v8 = vadd.f32 %v1468_v61, %v1452_v0  ;;  %v1499_v2 = vmax.f32 %v1483_v62, 0.0 }
 0x393   : > { %v1502_v17 = vmax.f32 %v1486_v3, 0.0 }
 0x394   : > { %v1500_v11 = vmax.f32 %v1484_v8, 0.0  ;;  %v2098_v16 = vpop.f32.mrb[28].mxu0 }
 0x395   : > { %v1841_v20 = vpack.c.bf16 %v1502_v17, %v1501_v9  ;;  %v1457_v21 = vadd.f32 %v2098_v16, %v2919_v5  ;;  %v1421_v22 = vpop.f32.mrb[29].mxu0 }
 0x396   : > { %v1836_v25 = vpack.c.bf16 %v1500_v11, %v1499_v2  ;;  %v1455_v26 = vadd.f32 %v2919_v5, %v1421_v22  ;;  %v2099_v27 = vpop.f32.mrb[30].mxu0 }
 0x397   : > { %1857 = vst [vmem:[%s2937_s12 + $0x28] sm:$0xff] %v1841_v20   ;;  %v1489_v29 = vadd.f32 %v1473_v10, %v1457_v21  ;;  %v1458_v30 = vadd.f32 %v2099_v27, %v2919_v5  ;;  %v1424_v32 = vpop.f32.mrb[31].mxu0 }
 0x398   : > { %1856 = vst [vmem:[%s2937_s12 + $0x20] sm:$0xff] %v1836_v25   ;;  %v1487_v33 = vadd.f32 %v1471_v12, %v1455_v26  ;;  %v1456_v35 = vadd.f32 %v2919_v5, %v1424_v32 }
 0x399   : > { %v1490_v13 = vadd.f32 %v1474_v31, %v1458_v30  ;;  %v1505_v36 = vmax.f32 %v1489_v29, 0.0 }
 0x39a   : > { %v1488_v19 = vadd.f32 %v1472_v28, %v1456_v35  ;;  %v1503_v18 = vmax.f32 %v1487_v33, 0.0 }
 0x39b   : > { %v1506_v4 = vmax.f32 %v1490_v13, 0.0 }
 0x39c   : > { %v1504_v37 = vmax.f32 %v1488_v19, 0.0 }
 0x39d   : > { %v1851_v38 = vpack.c.bf16 %v1506_v4, %v1505_v36 }
 0x39e   : > { %v1846_v5 = vpack.c.bf16 %v1504_v37, %v1503_v18 }
 0x39f   : > { %1859 = vst [vmem:[%s2937_s12 + $0x38] sm:$0xff] %v1851_v38  }
 0x3a0   : > { %1858 = vst [vmem:[%s2937_s12 + $0x30] sm:$0xff] %v1846_v5  }
 0x3a1   : > { %2396 = shalt.err (!%p2393_p4)
}
 0x3a2   : > { %s2397_s13 = scalar_lea.hbm %s2968_s23, 1024  ;;  %s2401_s14 = scalar_lea.hbm %s3022_s7, 4096 }
 0x3a3   : > { %p2398_p9 = scmp.ne.s32.totalorder %s2968_s23, %s2397_s13  ;;  %p2402_p8 = scmp.lt.u32.totalorder %s2968_s23, %s3022_s7 }
 0x3a4   : > { %p2403_p12 = scmp.lt.u32.totalorder %s2401_s14, %s2397_s13  ;;  %p2405_p0 = scmp.lt.u32.totalorder %s2397_s13, %s2968_s23 }
 0x3a5   : > { %p2399_p13 = pnand %p2398_p9, %p2661_p5 }
 0x3a6   : > { %p2404_p6 = por %p2403_p12, %p2402_p8 }
 0x3a7   : > { %p2400_p10 = pneg %p2399_p13 }
 0x3a8   : > { %p2406_p3 = por %p2405_p0, %p2404_p6 }
 0x3aa   : > { %p2407_p7 = pnand %p2406_p3, %p2400_p10 }
 0x3ac   : > { %2410 = shalt.err (!%p2407_p7)
}
 0x3ad   : > { %s2466_s16 = smov 64   ;;  %s2467_s29 = smov 4  }
 0x3ae   : > { %2146 = dma.vmem_to_hbm [thread:$0]  (%p2661_p5), %s2970_s21, 1024, %s2968_s23, %s1588_s28, %s2466_s16, %s2466_s16, %s2467_s29  }
 0x3af PF: > { %s3046_s11 = sld [smem:[#allocation15_spill]]  ;;  %p2173_p11 = scmp.ge.s32.totalorder %s2457_s27, 2 }
 0x3b0   : > { %s1617_s8 = sand.u32 1, %s2445_s24  }
 0x3b1   : > { %s1618_s30 = scalar_lea.sflag [#allocation4], %s1617_s8 }
 0x3b5   : > { %p3047_p1 = scmp.ne.s32.totalorder %s3046_s11, 0 }
 0x3b7   : > { %p2163_p2 = pnand %p2173_p11, %p3047_p1 }
 0x3b9   : > { %2440 = dma.done.wait (!%p2163_p2), %s1618_s30, 1024  }
 0x3ba   : > { %2442 = vsyncadd (!%p2163_p2), %s1618_s30, 4294966272  ;;  %p22_p4 = scmp.ge.s32.totalorder %s2647_s22, 6   ;;  %s3048_s24 = smov %s2449_s25 }
 0x3bb   : > { %s3049_s25 = smov %s2453_s26  ;;  %s3050_s26 = smov %s2657_s18 }
 0x3bc   : > { %s3051_s27 = smov %s2647_s22  ;;  %24 = sbr.rel (!%p22_p4) target bundleno = 7 (0x7), region = 107 }
 0x3c3   :  { %1623 = vsyncpa [#allocation3], 1 }
 0x3c4   :  { %1625 = vsyncpa [#allocation3 + $0x1], 1 }
 0x3c5   :  { %1626 = vsyncpa [#allocation6], 1 }
 0x3c6   :  { %1627 = vsyncpa [#allocation9], 1 }
 0x3c7   :  { %1628 = vsyncpa [#allocation4], 1 }
 0x3c8   :  { %1630 = vsyncpa [#allocation4 + $0x1], 1 }

</bundles_post_ra>
